<compile_context>
chip_gen: v6e
topology: v6e:2x2x1
jax: 0.10.0
libtpu: 0.0.40
codegen_flags: <defaults>
</compile_context>

<pallas_src>
import math

import jax
import jax.numpy as jnp
import numpy as np
from jax.experimental import pallas as pl
from jax.experimental.pallas import tpu as pltpu

jax.config.update("jax_default_matmul_precision", "highest")


# ---------------------------------------------------------------------------
# Operator precomputation (pure JAX, runs once at parameter-preparation time)
# ---------------------------------------------------------------------------
def _ft_operator(wre, wim, n_len, modes):
    """Combined real operator of sparseKernelFT1d for signal length n_len.

    Acts on the natural row-major flattening of (N, c, k):
        y_flat = x_flat @ K,  with K[(n, i), (m, o)] and i/o the c*k channel index.
    Equivalent to: permute -> rfft -> truncate to `modes` -> 'bix,iox->box' complex mix
    -> zero-pad -> irfft -> permute back (torch.fft semantics, norm='backward').
    """
    ck = wre.shape[0]
    lm = min(modes, n_len // 2 + 1)
    n = np.arange(n_len)[:, None].astype(np.float64)
    f = np.arange(lm)[None, :].astype(np.float64)
    ang = 2.0 * np.pi * n * f / n_len
    fc = np.cos(ang)                        # (N, L)  Re rfft
    fs = -np.sin(ang)                       # (N, L)  Im rfft
    fr = np.arange(lm)
    wgt = np.where((fr == 0) | ((n_len % 2 == 0) & (fr == n_len // 2)), 1.0, 2.0)
    ic = (wgt[:, None] * np.cos(ang.T)) / n_len      # (L, N)  irfft, real-part path
    is_ = (-wgt[:, None] * np.sin(ang.T)) / n_len    # (L, N)  irfft, imag-part path
    fc, fs = jnp.asarray(fc, jnp.float32), jnp.asarray(fs, jnp.float32)
    ic, is_ = jnp.asarray(ic, jnp.float32), jnp.asarray(is_, jnp.float32)
    wre, wim = wre[:, :, :lm], wim[:, :, :lm]
    # y[o, m] = sum_{i,n,f} x[i,n] * [fc*Wre*ic - fs*Wim*ic + fc*Wim*is + fs*Wre*is]
    k4 = (jnp.einsum('nf,iof,fm->nimo', fc, wre, ic)
          - jnp.einsum('nf,iof,fm->nimo', fs, wim, ic)
          + jnp.einsum('nf,iof,fm->nimo', fc, wim, is_)
          + jnp.einsum('nf,iof,fm->nimo', fs, wre, is_))
    return k4.reshape(n_len * ck, n_len * ck)


def build_mwt_operators(params, N, c, k, alpha, L=0, lane=128):
    """Pre-compose the ENTIRE MWT_CZ1d forward into one dense operator + bias.

    Returns W (P, P), b (1, P) with P = nl*ck rounded up to a multiple of 128, such that
        out_flat = x_flat_padded @ W + b   (valid columns: [:nl*ck]).
    """
    ck = c * k
    ns = int(math.floor(math.log2(N)))
    nl = 2 ** int(math.ceil(math.log2(N)))
    nlev = ns - L
    eye_c = jnp.eye(c, dtype=jnp.float32)
    ec_d, ec_s = params['ec_d'], params['ec_s']
    rc_e, rc_o = params['rc_e'], params['rc_o']
    # Per even/odd-pair operators of wavelet_transform (block-diagonal over channels).
    e_d = jnp.concatenate([jnp.kron(eye_c, ec_d[:k]), jnp.kron(eye_c, ec_d[k:])], axis=0)  # (2ck, ck)
    e_s = jnp.concatenate([jnp.kron(eye_c, ec_s[:k]), jnp.kron(eye_c, ec_s[k:])], axis=0)  # (2ck, ck)
    # Per-position operators of evenOdd (interleaved even/odd output columns).
    rs_loc = jnp.concatenate([jnp.kron(eye_c, rc_e[:k]), jnp.kron(eye_c, rc_o[:k])], axis=1)  # (ck, 2ck)
    rd_loc = jnp.concatenate([jnp.kron(eye_c, rc_e[k:]), jnp.kron(eye_c, rc_o[k:])], axis=1)  # (ck, 2ck)

    m_ud, m_us, m_s, r_s, r_d = [], [], [], [], []
    cur = nl
    for _ in range(nlev):
        nh = cur // 2
        eye_h = jnp.eye(nh, dtype=jnp.float32)
        d_op = jnp.kron(eye_h, e_d)                     # (cur*ck, nh*ck): x -> d
        s_op = jnp.kron(eye_h, e_s)                     # (cur*ck, nh*ck): x -> s
        k_a = _ft_operator(params['A_wre'], params['A_wim'], nh, alpha)
        k_b = _ft_operator(params['B_wre'], params['B_wim'], nh, alpha)
        k_c = _ft_operator(params['C_wre'], params['C_wim'], nh, alpha)
        m_ud.append(d_op @ k_a + s_op @ k_b)            # x -> Ud = A(d) + B(s)
        m_us.append(d_op @ k_c)                         # x -> Us = C(d)
        m_s.append(s_op)                                # x -> next-level x (= s)
        r_s.append(jnp.kron(eye_h, rs_loc))             # (nh*ck, cur*ck): (x+Us) path of evenOdd
        r_d.append(jnp.kron(eye_h, rd_loc))             # (nh*ck, cur*ck): Ud path of evenOdd
        cur = nh
    t0_w = jnp.kron(jnp.eye(cur * c, dtype=jnp.float32), params['T0_wt'])   # (cur*ck, cur*ck)
    t0_b = jnp.tile(params['T0_b'], cur * c).reshape(1, cur * ck)

    # ---- compose everything: out_flat = x_flat @ W + b -----------------------------------
    # P_l maps the input flat state to the level-l decomposed state: x_l = x_0 @ P_l.
    P_chain = [jnp.eye(nl * ck, dtype=jnp.float32)]
    for l in range(nlev):
        P_chain.append(P_chain[-1] @ m_s[l])
    W = P_chain[nlev] @ t0_w                            # T0 on the coarsest level
    bvec = t0_b
    for l in range(nlev - 1, -1, -1):                   # reconstruction, composed algebraically
        W = (W + P_chain[l] @ m_us[l]) @ r_s[l] + (P_chain[l] @ m_ud[l]) @ r_d[l]
        bvec = bvec @ r_s[l]

    width = nl * ck
    P = max(lane, ((width + lane - 1) // lane) * lane)  # pad 192 -> 256 lanes
    W_pad = jnp.zeros((P, P), jnp.float32).at[:width, :width].set(W)
    b_pad = jnp.zeros((1, P), jnp.float32).at[:, :width].set(bvec)
    return {'W': W_pad, 'b': b_pad, 'nl': nl, 'ck': ck, 'width': width, 'P': P}


# ---------------------------------------------------------------------------
# Fused Pallas kernel: whole MWT_CZ1d forward, whole batch, in one MXU matmul
# ---------------------------------------------------------------------------
def _mwt_fused_kernel(x_ref, w_ref, b_ref, o_ref):
    o_ref[...] = (jnp.dot(x_ref[...], w_ref[...],
                          preferred_element_type=jnp.float32) + b_ref[...])


def mwt_cz1d_forward(x, ops):
    B, N, c, k = x.shape
    nl, width, P = ops['nl'], ops['width'], ops['P']
    if nl > N:                                          # wrap-pad to the next power of two
        x = jnp.concatenate([x, x[:, :nl - N]], axis=1)
    x_flat = x.reshape(B, width)
    if P > width:
        x_flat = jnp.pad(x_flat, ((0, 0), (0, P - width)))
    cost = pl.CostEstimate(flops=2 * B * P * P, transcendentals=0,
                           bytes_accessed=4 * (P * P + P + 2 * B * P))
    out = pl.pallas_call(
        _mwt_fused_kernel,
        out_shape=jax.ShapeDtypeStruct((B, P), jnp.float32),
        grid=(1,),                                      # single grid step: whole batch at once
        in_specs=[pl.BlockSpec((B, P), lambda i: (0, 0)),
                  pl.BlockSpec((P, P), lambda i: (0, 0)),
                  pl.BlockSpec((1, P), lambda i: (0, 0))],
        out_specs=pl.BlockSpec((B, P), lambda i: (0, 0)),
        compiler_params=pltpu.CompilerParams(dimension_semantics=("arbitrary",)),
        cost_estimate=cost,
    )(x_flat, ops['W'], ops['b'])
    return out[:, :width].reshape(B, nl, c, k)[:, :N]


# ---------------------------------------------------------------------------
# Pure-JAX reference (jnp.fft + jnp.matmul, mirrors the torch forward) for validation
# ---------------------------------------------------------------------------
def _ref_sparse_ft(x, wre, wim, modes):
    B, N, c, k = x.shape
    ck = c * k
    xv = jnp.transpose(x.reshape(B, N, ck), (0, 2, 1))
    xf = jnp.fft.rfft(xv, axis=-1)
    l = min(modes, N // 2 + 1)
    w = (wre + 1j * wim)[:, :, :l].astype(jnp.complex64)
    out = jnp.einsum('bix,iox->box', xf[:, :, :l], w)
    out_ft = jnp.zeros((B, ck, N // 2 + 1), dtype=jnp.complex64).at[:, :, :l].set(out)
    y = jnp.fft.irfft(out_ft, n=N, axis=-1)
    return jnp.transpose(y, (0, 2, 1)).reshape(B, N, c, k).astype(jnp.float32)


def _ref_forward(x, params, k, alpha, L=0):
    B, N, c, _ = x.shape
    ns = int(math.floor(math.log2(N)))
    nl = 2 ** int(math.ceil(math.log2(N)))
    x = jnp.concatenate([x, x[:, 0:nl - N]], axis=1)
    Ud, Us = [], []
    for _ in range(ns - L):
        xa = jnp.concatenate([x[:, ::2], x[:, 1::2]], axis=-1)
        d = xa @ params['ec_d']
        x = xa @ params['ec_s']
        Ud.append(_ref_sparse_ft(d, params['A_wre'], params['A_wim'], alpha)
                  + _ref_sparse_ft(x, params['B_wre'], params['B_wim'], alpha))
        Us.append(_ref_sparse_ft(d, params['C_wre'], params['C_wim'], alpha))
    x = x @ params['T0_wt'] + params['T0_b']
    for i in range(ns - 1 - L, -1, -1):
        x = x + Us[i]
        x = jnp.concatenate([x, Ud[i]], axis=-1)
        x_e = x @ params['rc_e']
        x_o = x @ params['rc_o']
        Bx, Nx, cx, kx = x_e.shape
        x = jnp.stack([x_e, x_o], axis=2).reshape(Bx, Nx * 2, cx, kx)
    return x[:, :N]


# ---------------------------------------------------------------------------
# Deterministic parameter initialization (shapes match MWT_CZ1d.__init__)
# ---------------------------------------------------------------------------
def init_params(key, k, alpha, c):
    ck = c * k
    keys = jax.random.split(key, 12)
    # TODO(synk): get_filter('legendre', k) (Legendre-quadrature filter bank construction) is
    # replaced by deterministic synthetic (k, k) filters of identical shapes; the forward-pass
    # math downstream of the filters is reproduced exactly.
    H0, H1, G0, G1, PHI0, PHI1 = [
        jax.random.uniform(keys[i], (k, k), jnp.float32) for i in range(6)
    ]
    H0r, G0r = H0 @ PHI0, G0 @ PHI0
    H1r, G1r = H1 @ PHI1, G1 @ PHI1
    zero = lambda m: jnp.where(jnp.abs(m) < 1e-8, 0.0, m)
    H0r, H1r, G0r, G1r = map(zero, (H0r, H1r, G0r, G1r))

    params = {
        'ec_s': jnp.concatenate([H0.T, H1.T], axis=0),   # (2k, k)
        'ec_d': jnp.concatenate([G0.T, G1.T], axis=0),   # (2k, k)
        'rc_e': jnp.concatenate([H0r, G0r], axis=0),     # (2k, k)
        'rc_o': jnp.concatenate([H1r, G1r], axis=0),     # (2k, k)
    }
    scale = 1.0 / (ck * ck)
    for name, i in (('A', 6), ('B', 7), ('C', 8)):
        kre, kim = jax.random.split(keys[i])
        params[f'{name}_wre'] = scale * jax.random.uniform(kre, (ck, ck, alpha), jnp.float32)
        params[f'{name}_wim'] = scale * jax.random.uniform(kim, (ck, ck, alpha), jnp.float32)
    bound = 1.0 / math.sqrt(k)
    params['T0_wt'] = jax.random.uniform(keys[9], (k, k), jnp.float32, -bound, bound)  # W^T
    params['T0_b'] = jax.random.uniform(keys[10], (k,), jnp.float32, -bound, bound)
    return params


# ---------------------------------------------------------------------------
if __name__ == "__main__":
    k, alpha, L, c = 3, 4, 0, 4
    B = 2

    key = jax.random.PRNGKey(0)
    kp, kx1, kx2 = jax.random.split(key, 3)
    params = init_params(kp, k, alpha, c)

    # Case 1: N = 16 (power of two, nl == N)
    N = 16
    x = jax.random.normal(kx1, (B, N, c, k), jnp.float32)
    ops = build_mwt_operators(params, N, c, k, alpha, L)
    out = jax.block_until_ready(mwt_cz1d_forward(x, ops))
    assert out.shape == (B, N, c, k), out.shape
    ref = jax.block_until_ready(_ref_forward(x, params, k, alpha, L))
    rel_err = float(jnp.max(jnp.abs(out - ref)) / (jnp.max(jnp.abs(ref)) + 1e-6))
    assert rel_err < 1e-3, f"N=16 mismatch vs jnp.fft reference: rel_err={rel_err}"

    # Case 2: N = 12 (non power of two, exercises the nl > N wrap-pad branch)
    N2 = 12
    x2 = jax.random.normal(kx2, (B, N2, c, k), jnp.float32)
    ops2 = build_mwt_operators(params, N2, c, k, alpha, L)
    out2 = jax.block_until_ready(mwt_cz1d_forward(x2, ops2))
    assert out2.shape == (B, N2, c, k), out2.shape
    ref2 = jax.block_until_ready(_ref_forward(x2, params, k, alpha, L))
    rel_err2 = float(jnp.max(jnp.abs(out2 - ref2)) / (jnp.max(jnp.abs(ref2)) + 1e-6))
    assert rel_err2 < 1e-3, f"N=12 mismatch vs jnp.fft reference: rel_err={rel_err2}"

    print("KERNEL_OK")
</pallas_src>

<mosaic_0001>
module attributes {stable_mosaic.version = 11 : i64} {
  func.func @_mwt_fused_kernel(%arg0: i32, %arg1: memref<2x256xf32, #tpu.memory_space<vmem>>, %arg2: memref<256x256xf32, #tpu.memory_space<vmem>>, %arg3: memref<1x256xf32, #tpu.memory_space<vmem>>, %arg4: memref<2x256xf32, #tpu.memory_space<vmem>>) attributes {dimension_semantics = [#tpu.dimension_semantics<arbitrary>], iteration_bounds = array<i64: 1>, scalar_prefetch = 0 : i64, scratch_operands = 0 : i64, tpu.core_type = #tpu.core_type<tc>, window_params = [{pipeline_mode = #tpu.pipeline_mode<synchronous>, transform_indices = @transform_0, window_bounds = array<i64: 2, 256>}, {pipeline_mode = #tpu.pipeline_mode<synchronous>, transform_indices = @transform_1, window_bounds = array<i64: 256, 256>}, {pipeline_mode = #tpu.pipeline_mode<synchronous>, transform_indices = @transform_2, window_bounds = array<i64: 1, 256>}, {pipeline_mode = #tpu.pipeline_mode<synchronous>, transform_indices = @transform_3, window_bounds = array<i64: 2, 256>}]} {
    %c0 = arith.constant 0 : index
    %c0_0 = arith.constant 0 : index
    %0 = vector.load %arg1[%c0, %c0_0] : memref<2x256xf32, #tpu.memory_space<vmem>>, vector<2x256xf32>
    %c0_1 = arith.constant 0 : index
    %c0_2 = arith.constant 0 : index
    %1 = vector.load %arg2[%c0_1, %c0_2] : memref<256x256xf32, #tpu.memory_space<vmem>>, vector<256x256xf32>
    %cst = arith.constant dense<0.000000e+00> : vector<2x256xf32>
    %2 = tpu.matmul %0, %1, %cst {dimension_numbers = #tpu.dot_dimension_numbers<[1], [0], [0], [1], [0, 0, 1, 1], [], []>, precision = #tpu.contract_precision<fp32>} : vector<2x256xf32>, vector<256x256xf32>, vector<2x256xf32> -> vector<2x256xf32>
    %c0_3 = arith.constant 0 : index
    %c0_4 = arith.constant 0 : index
    %3 = vector.load %arg3[%c0_3, %c0_4] : memref<1x256xf32, #tpu.memory_space<vmem>>, vector<1x256xf32>
    %4 = vector.broadcast %3 : vector<1x256xf32> to vector<2x256xf32>
    %5 = arith.addf %2, %4 : vector<2x256xf32>
    %c0_5 = arith.constant 0 : index
    %c0_6 = arith.constant 0 : index
    %6 = vector.load %arg4[%c0_5, %c0_6] : memref<2x256xf32, #tpu.memory_space<vmem>>, vector<2x256xf32>
    tpu.vector_store %arg4[%c0_5, %c0_6], %5 {strides = array<i32>} : memref<2x256xf32, #tpu.memory_space<vmem>>, vector<2x256xf32>,
    return
  }
  func.func @transform_0(%arg0: i32) -> (i32, i32) {
    %c0_i32 = arith.constant 0 : i32
    %c0_i32_0 = arith.constant 0 : i32
    %c0_i32_1 = arith.constant 0 : i32
    return %c0_i32, %c0_i32_0 : i32, i32
  }
  func.func @transform_1(%arg0: i32) -> (i32, i32) {
    %c0_i32 = arith.constant 0 : i32
    %c0_i32_0 = arith.constant 0 : i32
    %c0_i32_1 = arith.constant 0 : i32
    return %c0_i32, %c0_i32_0 : i32, i32
  }
  func.func @transform_2(%arg0: i32) -> (i32, i32) {
    %c0_i32 = arith.constant 0 : i32
    %c0_i32_0 = arith.constant 0 : i32
    %c0_i32_1 = arith.constant 0 : i32
    return %c0_i32, %c0_i32_0 : i32, i32
  }
  func.func @transform_3(%arg0: i32) -> (i32, i32) {
    %c0_i32 = arith.constant 0 : i32
    %c0_i32_0 = arith.constant 0 : i32
    %c0_i32_1 = arith.constant 0 : i32
    return %c0_i32, %c0_i32_0 : i32, i32
  }
}

</mosaic_0001>

<bundles_post_ra>
// kernel: tpu_custom_call.1
= control target key start
LH: loop header
LB: loop body
LE: loop exit
PB: predicated region body
PF: predicated region fallthrough
CT: control target
= control target key end

     0   :  { %8 = vsyncpa [#allocation3], 0  ;;  %s2761_s0 = inlined_call_operand.hbm [shape: f32[2,256], index: 0, kind: input, shape index: {}]   ;;  %s2762_s1 = inlined_call_operand.hbm [shape: f32[256,256], index: 1, kind: input, shape index: {}]   ;;  %s2763_s2 = inlined_call_operand.vmem [shape: f32[1,256], index: 2, kind: input, shape index: {}]   ;;  %s2764_s3 = inlined_call_operand.hbm [shape: f32[2,256], index: 3, kind: output, shape index: {}]  }
   0x1   :  { %9 = vsyncpa [#allocation6], 0 }
   0x2   :  { %10 = vsyncpa [#allocation4], 0  ;;  %s1514_s12 = smov [#allocation2]   ;;  %s1515_s14 = smov [#allocation5]  }
   0x3   :  { %s17_s13 = sshll.u32 %s1514_s12, 4  ;;  %s26_s15 = sshll.u32 %s1515_s14, 4  ;;  %s18_s13 = int_to_ptr.vmem [resolvable:$true] %s17_s13  ;;  %s27_s15 = int_to_ptr.vmem [resolvable:$true] %s26_s15 }
   0x4   :  { %s1456_s16 = scalar_lea.vmem %s18_s13, 64  ;;  %p1461_p1 = scmp.lt.s32.totalorder %s18_s13, %s18_s13 }
   0x5   :  { %p1457_p0 = scmp.ne.s32.totalorder %s18_s13, %s1456_s16  ;;  %p1462_p2 = scmp.lt.s32.totalorder %s1456_s16, %s1456_s16 }
   0x7   :  { %p1463_p3 = por %p1462_p2, %p1461_p1 }
   0x9   :  { %p1464_p4 = pnand %p1463_p3, %p1457_p0 }
   0xb   :  { %1467 = shalt.err (!%p1464_p4)
}
   0xc   :  { %20 = dma.hbm_to_vmem [thread:$0]  %s2761_s0, 64, %s18_s13, [#allocation3]  }
   0xd   :  { %s1476_s19 = scalar_lea.vmem %s27_s15, 8192  ;;  %p1481_p6 = scmp.lt.s32.totalorder %s27_s15, %s27_s15 }
   0xe   :  { %p1477_p5 = scmp.ne.s32.totalorder %s27_s15, %s1476_s19  ;;  %p1482_p7 = scmp.lt.s32.totalorder %s1476_s19, %s1476_s19 }
  0x10   :  { %p1483_p8 = por %p1482_p7, %p1481_p6 }
  0x12   :  { %p1484_p9 = pnand %p1483_p8, %p1477_p5 }
  0x14   :  { %1487 = shalt.err (!%p1484_p9)
}
  0x15   :  { %s1516_s20 = smov 256   ;;  %s1517_s21 = smov 16  }
  0x16   :  { %32 = dma.hbm_to_vmem [thread:$0]  %s2762_s1, 8192, %s27_s15, [#allocation6], %s1516_s20, %s1516_s20, %s1517_s21  }
  0x17   :  { %1508 = dma.done.wait [#allocation3], 64  }
  0x18   :  { %1509 = vsyncadd [#allocation3], 4294967232 }
  0x19   :  { %1510 = dma.done.wait [#allocation6], 8192  }
  0x1a   :  { %1511 = vsyncadd [#allocation6], 4294959104  ;;  %v73_v0 = vld [vmem:[#allocation5 + $0xf8] sm:$0xff]  ;;  %v72_v1 = vld [vmem:[#allocation5 + $0xf0] sm:$0xff] }
  0x1b   :  { %v71_v2 = vld [vmem:[#allocation5 + $0xe8] sm:$0xff]  ;;  %v1545_v3 = vand.u32 4294901760, %v73_v0  ;;  %v1547_v4 = vand.u32 4294901760, %v72_v1  ;;  %v70_v6 = vld [vmem:[#allocation5 + $0xe0] sm:$0xff]  ;;  %v69_v7 = vld [vmem:[#allocation5 + $0xd8] sm:$0xff] }
  0x1c   :  { %v1549_v5 = vand.u32 4294901760, %v71_v2  ;;  %v68_v8 = vld [vmem:[#allocation5 + $0xd0] sm:$0xff]  ;;  %v1551_v9 = vand.u32 4294901760, %v70_v6  ;;  %v1553_v10 = vand.u32 4294901760, %v69_v7  ;;  %v67_v12 = vld [vmem:[#allocation5 + $0xc8] sm:$0xff]  ;;  %v66_v13 = vld [vmem:[#allocation5 + $0xc0] sm:$0xff] }
  0x1d   :  { %v1555_v11 = vand.u32 4294901760, %v68_v8  ;;  %v65_v14 = vld [vmem:[#allocation5 + $0xb8] sm:$0xff]  ;;  %130 = vmatprep.subr.mxu0 %v1545_v3  ;;  %v1558_v15 = vand.u32 4294901760, %v67_v12  ;;  %v1560_v16 = vand.u32 4294901760, %v66_v13  ;;  %v1565_v18 = vsub.f32 %v73_v0, %v1545_v3  ;;  %v1567_v19 = vld [vmem:[#allocation5 + $0xb0] sm:$0xff]  ;;  %v1569_v20 = vld [vmem:[#allocation5 + $0xa8] sm:$0xff] }
  0x1e   :  { %v1562_v17 = vand.u32 4294901760, %v65_v14  ;;  %v1571_v21 = vld [vmem:[#allocation5 + $0xa0] sm:$0xff]  ;;  %132 = vmatpush1.msra.mxu0 %v1547_v4  ;;  %v1575_v22 = vand.u32 4294901760, %v1567_v19  ;;  %v1578_v23 = vsub.f32 %v72_v1, %v1547_v4  ;;  %v1581_v24 = vand.u32 4294901760, %v1569_v20  ;;  %v1586_v26 = vld [vmem:[#allocation5 + $0x98] sm:$0xff]  ;;  %v1588_v27 = vld [vmem:[#allocation5 + $0x90] sm:$0xff] }
  0x1f   :  { %2972 = vst [vmem:[#allocation11_spill] sm:$0xff] %v1565_v18  ;;  %v1584_v25 = vsub.f32 %v71_v2, %v1549_v5  ;;  %v1590_v28 = vld [vmem:[#allocation5 + $0x88] sm:$0xff]  ;;  %134 = vmatprep.subr.mxu0 %v1549_v5  ;;  %v2778_v29 = vand.u32 4294901760, %v1565_v18  ;;  %v1595_v30 = vand.u32 4294901760, %v1571_v21  ;;  %v1598_v31 = vsub.f32 %v70_v6, %v1551_v9  ;;  %v1612_v37 = vld [vmem:[#allocation5 + $0x80] sm:$0xff]  ;;  %v1636_v46 = vld [vmem:[#allocation5 + $0x78] sm:$0xff] }
  0x20   :  { %2973 = vst [vmem:[#allocation12_spill] sm:$0xff] %v1581_v24  ;;  %v1601_v32 = vand.u32 4294901760, %v1586_v26  ;;  %136 = vmatpush1.msra.mxu0 %v1551_v9  ;;  %v2776_v33 = vand.u32 4294901760, %v1578_v23  ;;  %v1607_v35 = vsub.f32 %v69_v7, %v1553_v10  ;;  %v1610_v36 = vand.u32 4294901760, %v1588_v27  ;;  %v1646_v51 = vld [vmem:[#allocation5 + $0x70] sm:$0xff]  ;;  %v1653_v56 = vld [vmem:[#allocation5 + $0x68] sm:$0xff] }
  0x21   :  { %2974 = vst [vmem:[#allocation13_spill] sm:$0xff] %v1595_v30  ;;  %v2775_v34 = vand.u32 4294901760, %v1584_v25  ;;  %138 = vmatprep.subr.mxu0 %v1553_v10  ;;  %v277_v38 = vsub.f32 %v1565_v18, %v2778_v29  ;;  %v2773_v39 = vand.u32 4294901760, %v1598_v31  ;;  %v1620_v40 = vsub.f32 %v68_v8, %v1555_v11  ;;  %v1665_v61 = vld [vmem:[#allocation5 + $0x60] sm:$0xff]  ;;  %v1677_v2 = vld [vmem:[#allocation5 + $0x58] sm:$0xff] }
  0x22   :  { %2975 = vst [vmem:[#allocation14_spill] sm:$0xff] %v1601_v32  ;;  %2976 = vst [vmem:[#allocation15_spill] sm:$0xff] %v1610_v36  ;;  %v1623_v41 = vand.u32 4294901760, %v1590_v28  ;;  %140 = vmatpush1.msra.mxu0 %v1555_v11  ;;  %v283_v42 = vsub.f32 %v1578_v23, %v2776_v33  ;;  %v2771_v44 = vand.u32 4294901760, %v1607_v35  ;;  %v1634_v45 = vsub.f32 %v67_v12, %v1558_v15 }
  0x23   :  { %v289_v43 = vsub.f32 %v1584_v25, %v2775_v34  ;;  %142 = vmatprep.subr.mxu0 %v1558_v15  ;;  %v278_v47 = vand.u32 4294901760, %v277_v38  ;;  %v295_v48 = vsub.f32 %v1598_v31, %v2773_v39  ;;  %v2770_v49 = vand.u32 4294901760, %v1620_v40  ;;  %v1768_v39 = vld [vmem:[#allocation5 + $0x28] sm:$0xff]  ;;  %v1778_v34 = vld [vmem:[#allocation5 + $0x20] sm:$0xff] }
  0x24   :  { %2977 = vst [vmem:[#allocation16_spill] sm:$0xff] %v1623_v41  ;;  %v1644_v50 = vand.u32 4294901760, %v1612_v37  ;;  %144 = vmatpush1.msra.mxu0 %v1560_v16  ;;  %v284_v52 = vand.u32 4294901760, %v283_v42  ;;  %v301_v54 = vsub.f32 %v1607_v35, %v2771_v44  ;;  %v2768_v55 = vand.u32 4294901760, %v1634_v45 }
  0x25   :  { %v290_v53 = vand.u32 4294901760, %v289_v43  ;;  %146 = vmatprep.subr.mxu0 %v1562_v17  ;;  %279 = vmatprep.subr.mxu1 %v278_v47  ;;  %v296_v57 = vand.u32 4294901760, %v295_v48  ;;  %v307_v58 = vsub.f32 %v1620_v40, %v2770_v49  ;;  %v1660_v59 = vsub.f32 %v66_v13, %v1560_v16  ;;  %v1688_v13 = vld [vmem:[#allocation5 + $0x50] sm:$0xff] }
  0x26   :  { %2978 = vst [vmem:[#allocation17_spill] sm:$0xff] %v1644_v50  ;;  %v1663_v60 = vand.u32 4294901760, %v1636_v46  ;;  %148 = vmatpush1.msra.mxu0 %v1575_v22  ;;  %285 = vmatpush1.msra.mxu1 %v284_v52  ;;  %v302_v62 = vand.u32 4294901760, %v301_v54  ;;  %v313_v63 = vsub.f32 %v1634_v45, %v2768_v55  ;;  %v1672_v0 = vsub.f32 %v65_v14, %v1562_v17  ;;  %v1755_v49 = vld [vmem:[#allocation5 + $0x30] sm:$0xff] }
  0x27   :  { %v1675_v1 = vand.u32 4294901760, %v1646_v51  ;;  %150 = vmatprep.subr.mxu0 %v1581_v24  ;;  %291 = vmatprep.subr.mxu1 %v290_v53  ;;  %v308_v6 = vand.u32 4294901760, %v307_v58  ;;  %v2766_v7 = vand.u32 4294901760, %v1660_v59  ;;  %v1683_v8 = vsub.f32 %v1567_v19, %v1575_v22 }
  0x28   :  { %2979 = vst [vmem:[#allocation18_spill] sm:$0xff] %v1663_v60  ;;  %v1686_v12 = vand.u32 4294901760, %v1653_v56  ;;  %152 = vmatpush1.msra.mxu0 %v1595_v30  ;;  %297 = vmatpush1.msra.mxu1 %v296_v57  ;;  %v314_v14 = vand.u32 4294901760, %v313_v63  ;;  %v2765_v38 = vand.u32 4294901760, %v1672_v0  ;;  %v1694_v42 = vsub.f32 %v1569_v20, %v1581_v24  ;;  %v1711_v20 = vld [vmem:[#allocation5 + $0x48] sm:$0xff] }
  0x29   :  { %2980 = vst [vmem:[#allocation19_spill] sm:$0xff] %v1675_v1  ;;  %v1697_v43 = vand.u32 4294901760, %v1665_v61  ;;  %154 = vmatprep.subr.mxu0 %v1601_v32  ;;  %303 = vmatprep.subr.mxu1 %v302_v62  ;;  %v319_v19 = vsub.f32 %v1660_v59, %v2766_v7  ;;  %v2767_v47 = vand.u32 4294901760, %v1683_v8  ;;  %v1706_v48 = vsub.f32 %v1571_v21, %v1595_v30 }
  0x2a   :  { %2981 = vst [vmem:[#allocation20_spill] sm:$0xff] %v1686_v12  ;;  %v1709_v52 = vand.u32 4294901760, %v1677_v2  ;;  %156 = vmatpush1.msra.mxu0 %v1610_v36  ;;  %309 = vmatpush1.msra.mxu1 %v308_v6  ;;  %v325_v53 = vsub.f32 %v1672_v0, %v2765_v38  ;;  %v2769_v54 = vand.u32 4294901760, %v1694_v42  ;;  %v1720_v57 = vsub.f32 %v1586_v26, %v1601_v32  ;;  %v1734_v38 = vld [vmem:[#allocation5 + $0x40] sm:$0xff] }
  0x2b   :  { %2982 = vst [vmem:[#allocation21_spill] sm:$0xff] %v1697_v43  ;;  %v1723_v21 = vand.u32 4294901760, %v1688_v13  ;;  %158 = vmatprep.subr.mxu0 %v1623_v41  ;;  %315 = vmatprep.subr.mxu1 %v314_v14  ;;  %v320_v58 = vand.u32 4294901760, %v319_v19  ;;  %v331_v62 = vsub.f32 %v1683_v8, %v2767_v47  ;;  %v2772_v63 = vand.u32 4294901760, %v1706_v48  ;;  %v1744_v47 = vld [vmem:[#allocation5 + $0x38] sm:$0xff] }
  0x2c   :  { %2983 = vst [vmem:[#allocation22_spill] sm:$0xff] %v1709_v52  ;;  %v1732_v6 = vsub.f32 %v1588_v27, %v1610_v36  ;;  %160 = vmatpush1.msra.mxu0 %v1644_v50  ;;  %v326_v26 = vand.u32 4294901760, %v325_v53  ;;  %v337_v14 = vsub.f32 %v1694_v42, %v2769_v54  ;;  %v2774_v19 = vand.u32 4294901760, %v1720_v57  ;;  %v1858_v36 = vld [vmem:[#allocation5 + $0x1f8] sm:$0xff] }
  0x2d   :  { %2984 = vst [vmem:[#allocation23_spill] sm:$0xff] %v1723_v21  ;;  %v1742_v7 = vand.u32 4294901760, %v1711_v20  ;;  %321 = vmatpush1.msra.mxu1 %v320_v58  ;;  %162 = vmatprep.subr.mxu0 %v1663_v60  ;;  %v332_v27 = vand.u32 4294901760, %v331_v62  ;;  %v343_v55 = vsub.f32 %v1706_v48, %v2772_v63  ;;  %v1753_v54 = vsub.f32 %v1590_v28, %v1623_v41 }
  0x2e   :  { %v2777_v53 = vand.u32 4294901760, %v1732_v6  ;;  %327 = vmatprep.subr.mxu1 %v326_v26  ;;  %164 = vmatpush1.msra.mxu0 %v1675_v1  ;;  %v338_v44 = vand.u32 4294901760, %v337_v14  ;;  %v349_v58 = vsub.f32 %v1720_v57, %v2774_v19  ;;  %v1762_v62 = vand.u32 4294901760, %v1734_v38 }
  0x2f   :  { %2985 = vst [vmem:[#allocation24_spill] sm:$0xff] %v1742_v7  ;;  %v1766_v63 = vsub.f32 %v1612_v37, %v1644_v50  ;;  %333 = vmatpush1.msra.mxu1 %v332_v27  ;;  %166 = vmatprep.subr.mxu0 %v1686_v12  ;;  %v344_v28 = vand.u32 4294901760, %v343_v55  ;;  %v2781_v14 = vand.u32 4294901760, %v1753_v54  ;;  %v1776_v19 = vand.u32 4294901760, %v1744_v47 }
  0x30   :  { %2986 = vst [vmem:[#allocation25_spill] sm:$0xff] %v1762_v62  ;;  %v355_v26 = vsub.f32 %v1732_v6, %v2777_v53  ;;  %339 = vmatprep.subr.mxu1 %v338_v44  ;;  %168 = vmatpush1.msra.mxu0 %v1697_v43  ;;  %v350_v37 = vand.u32 4294901760, %v349_v58  ;;  %v1784_v55 = vsub.f32 %v1636_v46, %v1663_v60  ;;  %v1787_v33 = vand.u32 4294901760, %v1755_v49  ;;  %v1789_v53 = vld [vmem:[#allocation5 + $0x18] sm:$0xff] }
  0x31   :  { %2987 = vst [vmem:[#allocation26_spill] sm:$0xff] %v1776_v19  ;;  %v2784_v27 = vand.u32 4294901760, %v1766_v63  ;;  %345 = vmatpush1.msra.mxu1 %v344_v28  ;;  %170 = vmatprep.subr.mxu0 %v1709_v52  ;;  %v361_v44 = vsub.f32 %v1753_v54, %v2781_v14  ;;  %v1797_v58 = vsub.f32 %v1646_v51, %v1675_v1  ;;  %v1800_v46 = vand.u32 4294901760, %v1768_v39  ;;  %v1814_v51 = vld [vmem:[#allocation5 + $0x10] sm:$0xff] }
  0x32   :  { %2988 = vst [vmem:[#allocation27_spill] sm:$0xff] %v1787_v33  ;;  %v356_v29 = vand.u32 4294901760, %v355_v26  ;;  %351 = vmatprep.subr.mxu1 %v350_v37  ;;  %172 = vmatpush1.msra.mxu0 %v1723_v21  ;;  %v1809_v60 = vsub.f32 %v1653_v56, %v1686_v12  ;;  %v1812_v14 = vand.u32 4294901760, %v1778_v34  ;;  %v1823_v26 = vand.u32 4294901760, %v1789_v53  ;;  %v1825_v56 = vld [vmem:[#allocation5 + $0x8] sm:$0xff] }
  0x33   :  { %2989 = vst [vmem:[#allocation28_spill] sm:$0xff] %v1800_v46  ;;  %v367_v28 = vsub.f32 %v1766_v63, %v2784_v27  ;;  %174 = vmatprep.subr.mxu0 %v1742_v7  ;;  %v362_v37 = vand.u32 4294901760, %v361_v44  ;;  %v1820_v27 = vsub.f32 %v1665_v61, %v1697_v43  ;;  %v2994_v50 = vand.u32 4294901760, %v1784_v55  ;;  %v1848_v44 = vld [vmem:[#allocation5] sm:$0xff] }
  0x34   :  { %2990 = vst [vmem:[#allocation29_spill] sm:$0xff] %v1809_v60  ;;  %2991 = vst [vmem:[#allocation30_spill] sm:$0xff] %v1812_v14  ;;  %357 = vmatpush1.msra.mxu1 %v356_v29  ;;  %176 = vmatpush1.msra.mxu0 %v1762_v62  ;;  %v1834_v1 = vsub.f32 %v1677_v2, %v1709_v52  ;;  %v2996_v61 = vand.u32 4294901760, %v1797_v58  ;;  %v1856_v41 = vand.u32 4294901760, %v1825_v56 }
  0x35   :  { %2992 = vst [vmem:[#allocation31_spill] sm:$0xff] %v1820_v27  ;;  %2993 = vst [vmem:[#allocation32_spill] sm:$0xff] %v1823_v26  ;;  %v368_v12 = vand.u32 4294901760, %v367_v28  ;;  %v373_v29 = vsub.f32 %v1784_v55, %v2994_v50  ;;  %363 = vmatprep.subr.mxu1 %v362_v37  ;;  %178 = vmatprep.subr.mxu0 %v1776_v19  ;;  %v1842_v28 = vand.u32 4294901760, %v1814_v51  ;;  %v2999_v37 = vand.u32 4294901760, %v1809_v60 }
  0x36   :  { %2995 = vst [vmem:[#allocation33_spill] sm:$0xff] %v1834_v1  ;;  %v379_v43 = vsub.f32 %v1797_v58, %v2996_v61  ;;  %v1846_v50 = vsub.f32 %v1688_v13, %v1723_v21  ;;  %180 = vmatpush1.msra.mxu0 %v1787_v33  ;;  %3000 = vst [vmem:[#allocation36_spill] sm:$0xff] %v1856_v41  ;;  %v3001_v13 = vand.u32 4294901760, %v1820_v27 }
  0x37   :  { %2997 = vst [vmem:[#allocation34_spill] sm:$0xff] %v1842_v28  ;;  %369 = vmatpush1.msra.mxu1 %v368_v12  ;;  %v374_v2 = vand.u32 4294901760, %v373_v29  ;;  %v385_v52 = vsub.f32 %v1809_v60, %v2999_v37  ;;  %182 = vmatprep.subr.mxu0 %v1800_v46  ;;  %v1867_v21 = vsub.f32 %v1711_v20, %v1742_v7  ;;  %v1869_v37 = vld [vmem:[#allocation5 + $0x1f0] sm:$0xff]  ;;  %v1876_v60 = vand.u32 4294901760, %v1848_v44  ;;  %v1882_v29 = vld [vmem:[#allocation5 + $0x1e8] sm:$0xff] }
  0x38   :  { %2998 = vst [vmem:[#allocation35_spill] sm:$0xff] %v1846_v50  ;;  %v380_v32 = vand.u32 4294901760, %v379_v43  ;;  %v391_v12 = vsub.f32 %v1820_v27, %v3001_v13  ;;  %184 = vmatpush1.msra.mxu0 %v1812_v14  ;;  %v3003_v43 = vand.u32 4294901760, %v1834_v1  ;;  %v1880_v13 = vsub.f32 %v1734_v38, %v1762_v62 }
  0x39   :  { %3002 = vst [vmem:[#allocation37_spill] sm:$0xff] %v1867_v21  ;;  %375 = vmatprep.subr.mxu1 %v374_v2  ;;  %v386_v61 = vand.u32 4294901760, %v385_v52  ;;  %3004 = vst [vmem:[#allocation38_spill] sm:$0xff] %v1876_v60  ;;  %186 = vmatprep.subr.mxu0 %v1823_v26  ;;  %v3006_v52 = vand.u32 4294901760, %v1846_v50  ;;  %v1901_v62 = vand.u32 4294901760, %v1869_v37 }
  0x3a   :  { %v397_v30 = vsub.f32 %v1834_v1, %v3003_v43  ;;  %3005 = vst [vmem:[#allocation39_spill] sm:$0xff] %v1880_v13  ;;  %381 = vmatpush1.msra.mxu1 %v380_v32  ;;  %v392_v20 = vand.u32 4294901760, %v391_v12  ;;  %v1890_v43 = vand.u32 4294901760, %v1858_v36  ;;  %v1892_v1 = vld [vmem:[#allocation5 + $0x1e0] sm:$0xff]  ;;  %188 = vmatpush1.msra.mxu0 %v1842_v28  ;;  %v1898_v12 = vsub.f32 %v1744_v47, %v1776_v19 }
  0x3b   :  { %v403_v2 = vsub.f32 %v1846_v50, %v3006_v52  ;;  %387 = vmatprep.subr.mxu1 %v386_v61  ;;  %3009 = vst [vmem:[#allocation42_spill] sm:$0xff] %v1901_v62  ;;  %v1903_v52 = vld [vmem:[#allocation5 + $0x1d8] sm:$0xff]  ;;  %190 = vmatprep.subr.mxu0 %v1856_v41  ;;  %v3010_v61 = vand.u32 4294901760, %v1867_v21  ;;  %v1911_v32 = vsub.f32 %v1755_v49, %v1787_v33  ;;  %v1914_v47 = vand.u32 4294901760, %v1882_v29  ;;  %v1928_v49 = vld [vmem:[#allocation5 + $0x1d0] sm:$0xff] }
  0x3c   :  { %3007 = vst [vmem:[#allocation40_spill] sm:$0xff] %v1890_v43  ;;  %v398_v38 = vand.u32 4294901760, %v397_v30  ;;  %3008 = vst [vmem:[#allocation41_spill] sm:$0xff] %v1898_v12  ;;  %393 = vmatpush1.msra.mxu1 %v392_v20  ;;  %192 = vmatpush1.msra.mxu0 %v1876_v60  ;;  %v3013_v19 = vand.u32 4294901760, %v1880_v13  ;;  %v1923_v50 = vsub.f32 %v1768_v39, %v1800_v46  ;;  %v1939_v39 = vld [vmem:[#allocation5 + $0x1c8] sm:$0xff] }
  0x3d   :  { %v404_v7 = vand.u32 4294901760, %v403_v2  ;;  %v409_v30 = vsub.f32 %v1867_v21, %v3010_v61  ;;  %3011 = vst [vmem:[#allocation43_spill] sm:$0xff] %v1911_v32  ;;  %3012 = vst [vmem:[#allocation44_spill] sm:$0xff] %v1914_v47  ;;  %v1926_v61 = vand.u32 4294901760, %v1892_v1  ;;  %194 = vmatprep.subr.mxu0 %v1890_v43  ;;  %v1937_v2 = vand.u32 4294901760, %v1903_v52 }
  0x3e   :  { %399 = vmatprep.subr.mxu1 %v398_v38  ;;  %v415_v20 = vsub.f32 %v1880_v13, %v3013_v19  ;;  %3014 = vst [vmem:[#allocation45_spill] sm:$0xff] %v1923_v50  ;;  %v2827_v38 = vand.u32 4294901760, %v1911_v32  ;;  %v1934_v19 = vsub.f32 %v1778_v34, %v1812_v14  ;;  %v3018_v13 = vand.u32 4294901760, %v1898_v12  ;;  %196 = vmatpush2.msra.mxu0 %v1901_v62 }
  0x3f   :  { %3015 = vst [vmem:[#allocation46_spill] sm:$0xff] %v1926_v61  ;;  %405 = vmatpush1.msra.mxu1 %v404_v7  ;;  %v410_v33 = vand.u32 4294901760, %v409_v30  ;;  %3017 = vst [vmem:[#allocation48_spill] sm:$0xff] %v1937_v2  ;;  %v1948_v30 = vsub.f32 %v1789_v53, %v1823_v26  ;;  %198 = vmatprep.subr.mxu0 %v1914_v47  ;;  %v1956_v14 = vand.u32 4294901760, %v1928_v49  ;;  %v1962_v7 = vld [vmem:[#allocation5 + $0x1c0] sm:$0xff] }
  0x40   :  { %3016 = vst [vmem:[#allocation47_spill] sm:$0xff] %v1934_v19  ;;  %v416_v46 = vand.u32 4294901760, %v415_v20  ;;  %v421_v21 = vsub.f32 %v1898_v12, %v3018_v13  ;;  %v427_v34 = vsub.f32 %v1911_v32, %v2827_v38  ;;  %v1960_v13 = vsub.f32 %v1814_v51, %v1842_v28  ;;  %200 = vmatpush2.msra.mxu0 %v1926_v61  ;;  %v1972_v32 = vld [vmem:[#allocation5 + $0x1b8] sm:$0xff] }
  0x41   :  { %3019 = vst [vmem:[#allocation49_spill] sm:$0xff] %v1948_v30  ;;  %411 = vmatprep.subr.mxu1 %v410_v33  ;;  %3020 = vst [vmem:[#allocation50_spill] sm:$0xff] %v1956_v14  ;;  %v3022_v33 = vand.u32 4294901760, %v1923_v50  ;;  %v1970_v20 = vand.u32 4294901760, %v1939_v39  ;;  %v3024_v51 = vand.u32 4294901760, %v1934_v19  ;;  %202 = vmatprep.subr.mxu0 %v1937_v2 }
  0x42   :  { %3021 = vst [vmem:[#allocation51_spill] sm:$0xff] %v1960_v13  ;;  %417 = vmatpush1.msra.mxu1 %v416_v46  ;;  %v422_v53 = vand.u32 4294901760, %v421_v21  ;;  %v428_v12 = vand.u32 4294901760, %v427_v34  ;;  %v1981_v46 = vsub.f32 %v1825_v56, %v1856_v41  ;;  %204 = vmatpush2.msra.mxu0 %v1956_v14  ;;  %v1994_v21 = vsub.f32 %v1848_v44, %v1876_v60  ;;  %v2017_v60 = vld [vmem:[#allocation5 + $0x198] sm:$0xff] }
  0x43   :  { %v433_v26 = vsub.f32 %v1923_v50, %v3022_v33  ;;  %3023 = vst [vmem:[#allocation52_spill] sm:$0xff] %v1970_v20  ;;  %v439_v28 = vsub.f32 %v1934_v19, %v3024_v51  ;;  %v1983_v33 = vld [vmem:[#allocation5 + $0x1b0] sm:$0xff]  ;;  %v3026_v50 = vand.u32 4294901760, %v1948_v30  ;;  %v1990_v51 = vand.u32 4294901760, %v1962_v7  ;;  %v1996_v19 = vld [vmem:[#allocation5 + $0x1a8] sm:$0xff]  ;;  %206 = vmatprep.subr.mxu0 %v1970_v20 }
  0x44   :  { %3025 = vst [vmem:[#allocation53_spill] sm:$0xff] %v1981_v46  ;;  %423 = vmatprep.subr.mxu1 %v422_v53  ;;  %3028 = vst [vmem:[#allocation55_spill] sm:$0xff] %v1994_v21  ;;  %v3029_v53 = vand.u32 4294901760, %v1960_v13  ;;  %v2004_v41 = vand.u32 4294901760, %v1972_v32 }
  0x45   :  { %v434_v38 = vand.u32 4294901760, %v433_v26  ;;  %v445_v34 = vsub.f32 %v1948_v30, %v3026_v50  ;;  %3027 = vst [vmem:[#allocation54_spill] sm:$0xff] %v1990_v51  ;;  %429 = vmatpush1.msra.mxu1 %v428_v12  ;;  %v440_v56 = vand.u32 4294901760, %v439_v28  ;;  %v2006_v30 = vld [vmem:[#allocation5 + $0x1a0] sm:$0xff]  ;;  %208 = vmatpush2.msra.mxu0 %v1990_v51  ;;  %v2850_v12 = vand.u32 4294901760, %v1994_v21 }
  0x46   :  { %v451_v26 = vsub.f32 %v1960_v13, %v3029_v53  ;;  %3030 = vst [vmem:[#allocation56_spill] sm:$0xff] %v2004_v41  ;;  %v2012_v28 = vsub.f32 %v1858_v36, %v1890_v43  ;;  %v2015_v53 = vand.u32 4294901760, %v1983_v33  ;;  %v3033_v13 = vand.u32 4294901760, %v1981_v46  ;;  %210 = vmatprep.subr.mxu0 %v2004_v41 }
  0x47   :  { %435 = vmatprep.subr.mxu1 %v434_v38  ;;  %v446_v44 = vand.u32 4294901760, %v445_v34  ;;  %v2025_v34 = vsub.f32 %v1869_v37, %v1901_v62  ;;  %v2028_v36 = vand.u32 4294901760, %v1996_v19  ;;  %v463_v43 = vsub.f32 %v1994_v21, %v2850_v12  ;;  %v2042_v37 = vld [vmem:[#allocation5 + $0x190] sm:$0xff] }
  0x48   :  { %3031 = vst [vmem:[#allocation57_spill] sm:$0xff] %v2012_v28  ;;  %3032 = vst [vmem:[#allocation58_spill] sm:$0xff] %v2015_v53  ;;  %441 = vmatpush1.msra.mxu1 %v440_v56  ;;  %v452_v50 = vand.u32 4294901760, %v451_v26  ;;  %v457_v38 = vsub.f32 %v1981_v46, %v3033_v13  ;;  %212 = vmatpush2.msra.mxu0 %v2015_v53  ;;  %v2037_v13 = vsub.f32 %v1882_v29, %v1914_v47  ;;  %v2053_v29 = vld [vmem:[#allocation5 + $0x188] sm:$0xff] }
  0x49   :  { %3034 = vst [vmem:[#allocation59_spill] sm:$0xff] %v2025_v34  ;;  %3035 = vst [vmem:[#allocation60_spill] sm:$0xff] %v2028_v36  ;;  %447 = vmatprep.subr.mxu1 %v446_v44  ;;  %v2040_v26 = vand.u32 4294901760, %v2006_v30  ;;  %v2861_v44 = vand.u32 4294901760, %v2025_v34  ;;  %214 = vmatprep.subr.mxu0 %v2028_v36  ;;  %v2048_v12 = vsub.f32 %v1892_v1, %v1926_v61  ;;  %v2051_v56 = vand.u32 4294901760, %v2017_v60 }
  0x4a   :  { %3036 = vst [vmem:[#allocation61_spill] sm:$0xff] %v2037_v13  ;;  %453 = vmatpush1.msra.mxu1 %v452_v50  ;;  %v458_v62 = vand.u32 4294901760, %v457_v38  ;;  %v464_v47 = vand.u32 4294901760, %v463_v43  ;;  %v3040_v21 = vand.u32 4294901760, %v2012_v28  ;;  %v2062_v38 = vsub.f32 %v1903_v52, %v1937_v2  ;;  %v2076_v50 = vld [vmem:[#allocation5 + $0x180] sm:$0xff] }
  0x4b   :  { %3037 = vst [vmem:[#allocation62_spill] sm:$0xff] %v2040_v26  ;;  %3038 = vst [vmem:[#allocation63_spill] sm:$0xff] %v2048_v12  ;;  %216 = vmatpush2.msra.mxu0 %v2040_v26  ;;  %v475_v1 = vsub.f32 %v2025_v34, %v2861_v44  ;;  %v2070_v43 = vand.u32 4294901760, %v2042_v37  ;;  %v2083_v61 = vand.u32 4294901760, %v2053_v29  ;;  %v2085_v34 = vld [vmem:[#allocation5 + $0x178] sm:$0xff]  ;;  %v3046_v27 = vand.u32 4294901760, %v2048_v12 }
  0x4c   :  { %3039 = vst [vmem:[#allocation64_spill] sm:$0xff] %v2051_v56  ;;  %v469_v46 = vsub.f32 %v2012_v28, %v3040_v21  ;;  %3041 = vst [vmem:[#allocation65_spill] sm:$0xff] %v2062_v38  ;;  %459 = vmatprep.subr.mxu1 %v458_v62  ;;  %218 = vmatprep.subr.mxu0 %v2051_v56  ;;  %v2074_v21 = vsub.f32 %v1928_v49, %v1956_v14  ;;  %v3044_v62 = vand.u32 4294901760, %v2037_v13 }
  0x4d   :  { %3042 = vst [vmem:[#allocation66_spill] sm:$0xff] %v2070_v43  ;;  %465 = vmatpush1.msra.mxu1 %v464_v47  ;;  %3045 = vst [vmem:[#allocation68_spill] sm:$0xff] %v2083_v61  ;;  %v476_v28 = vand.u32 4294901760, %v475_v1  ;;  %v487_v49 = vsub.f32 %v2048_v12, %v3046_v27  ;;  %220 = vmatpush2.msra.mxu0 %v2070_v43  ;;  %v3048_v14 = vand.u32 4294901760, %v2062_v38  ;;  %v2103_v27 = vand.u32 4294901760, %v2076_v50  ;;  %v2109_v12 = vld [vmem:[#allocation5 + $0x168] sm:$0xff] }
  0x4e   :  { %3043 = vst [vmem:[#allocation67_spill] sm:$0xff] %v2074_v21  ;;  %v470_v52 = vand.u32 4294901760, %v469_v46  ;;  %v481_v2 = vsub.f32 %v2037_v13, %v3044_v62  ;;  %v2094_v46 = vsub.f32 %v1939_v39, %v1970_v20  ;;  %v2096_v62 = vld [vmem:[#allocation5 + $0x170] sm:$0xff]  ;;  %222 = vmatprep.subr.mxu0 %v2083_v61  ;;  %v2107_v47 = vsub.f32 %v1962_v7, %v1990_v51 }
  0x4f   :  { %v493_v1 = vsub.f32 %v2062_v38, %v3048_v14  ;;  %3049 = vst [vmem:[#allocation70_spill] sm:$0xff] %v2103_v27  ;;  %v488_v39 = vand.u32 4294901760, %v487_v49  ;;  %v2116_v14 = vand.u32 4294901760, %v2085_v34  ;;  %v2118_v38 = vld [vmem:[#allocation5 + $0x160] sm:$0xff]  ;;  %224 = vmatpush2.msra.mxu0 %v2103_v27  ;;  %v2127_v49 = vand.u32 4294901760, %v2096_v62 }
  0x50   :  { %3047 = vst [vmem:[#allocation69_spill] sm:$0xff] %v2094_v46  ;;  %471 = vmatprep.subr.mxu1 %v470_v52  ;;  %v482_v44 = vand.u32 4294901760, %v481_v2  ;;  %3050 = vst [vmem:[#allocation71_spill] sm:$0xff] %v2107_v47  ;;  %v3051_v52 = vand.u32 4294901760, %v2074_v21  ;;  %v2884_v7 = vand.u32 4294901760, %v2107_v47  ;;  %v3055_v51 = vand.u32 4294901760, %v2094_v46 }
  0x51   :  { %477 = vmatpush2.msra.mxu1 %v476_v28  ;;  %3052 = vst [vmem:[#allocation72_spill] sm:$0xff] %v2116_v14  ;;  %v494_v13 = vand.u32 4294901760, %v493_v1  ;;  %v2124_v28 = vsub.f32 %v1972_v32, %v2004_v41  ;;  %3054 = vst [vmem:[#allocation74_spill] sm:$0xff] %v2127_v49  ;;  %226 = vmatprep.subr.mxu0 %v2116_v14  ;;  %v2137_v1 = vsub.f32 %v1983_v33, %v2015_v53  ;;  %v2154_v33 = vld [vmem:[#allocation5 + $0x150] sm:$0xff] }
  0x52   :  { %v499_v2 = vsub.f32 %v2074_v21, %v3051_v52  ;;  %483 = vmatprep.subr.mxu1 %v482_v44  ;;  %v2129_v52 = vld [vmem:[#allocation5 + $0x158] sm:$0xff]  ;;  %v505_v44 = vsub.f32 %v2094_v46, %v3055_v51  ;;  %v2140_v32 = vand.u32 4294901760, %v2109_v12  ;;  %v511_v41 = vsub.f32 %v2107_v47, %v2884_v7  ;;  %228 = vmatpush2.msra.mxu0 %v2127_v49 }
  0x53   :  { %3053 = vst [vmem:[#allocation73_spill] sm:$0xff] %v2124_v28  ;;  %489 = vmatpush2.msra.mxu1 %v488_v39  ;;  %3056 = vst [vmem:[#allocation75_spill] sm:$0xff] %v2137_v1  ;;  %v2149_v51 = vsub.f32 %v1996_v19, %v2028_v36  ;;  %v2160_v7 = vsub.f32 %v2006_v30, %v2040_v26  ;;  %v2163_v39 = vand.u32 4294901760, %v2129_v52  ;;  %v2165_v19 = vld [vmem:[#allocation5 + $0x148] sm:$0xff]  ;;  %v3062_v47 = vand.u32 4294901760, %v2124_v28 }
  0x54   :  { %v500_v20 = vand.u32 4294901760, %v499_v2  ;;  %3057 = vst [vmem:[#allocation76_spill] sm:$0xff] %v2140_v32  ;;  %495 = vmatprep.subr.mxu1 %v494_v13  ;;  %v2152_v2 = vand.u32 4294901760, %v2118_v38  ;;  %v506_v53 = vand.u32 4294901760, %v505_v44  ;;  %v2895_v13 = vand.u32 4294901760, %v2137_v1  ;;  %230 = vmatprep.subr.mxu0 %v2140_v32 }
  0x55   :  { %3058 = vst [vmem:[#allocation77_spill] sm:$0xff] %v2149_v51  ;;  %3060 = vst [vmem:[#allocation79_spill] sm:$0xff] %v2160_v7  ;;  %v512_v36 = vand.u32 4294901760, %v511_v41  ;;  %v517_v46 = vsub.f32 %v2124_v28, %v3062_v47  ;;  %v2174_v44 = vsub.f32 %v2017_v60, %v2051_v56  ;;  %v2182_v41 = vand.u32 4294901760, %v2154_v33 }
  0x56   :  { %3059 = vst [vmem:[#allocation78_spill] sm:$0xff] %v2152_v2  ;;  %501 = vmatpush2.msra.mxu1 %v500_v20  ;;  %3061 = vst [vmem:[#allocation80_spill] sm:$0xff] %v2163_v39  ;;  %232 = vmatpush2.msra.mxu0 %v2152_v2  ;;  %v523_v30 = vsub.f32 %v2137_v1, %v2895_v13  ;;  %v2186_v47 = vsub.f32 %v2042_v37, %v2070_v43  ;;  %v2188_v20 = vld [vmem:[#allocation5 + $0x140] sm:$0xff]  ;;  %v2195_v26 = vand.u32 4294901760, %v2165_v19  ;;  %v2197_v1 = vld [vmem:[#allocation5 + $0x138] sm:$0xff] }
  0x57   :  { %3063 = vst [vmem:[#allocation81_spill] sm:$0xff] %v2174_v44  ;;  %507 = vmatprep.subr.mxu1 %v506_v53  ;;  %234 = vmatprep.subr.mxu0 %v2163_v39  ;;  %3064 = vst [vmem:[#allocation82_spill] sm:$0xff] %v2182_v41  ;;  %v518_v60 = vand.u32 4294901760, %v517_v46  ;;  %v3066_v53 = vand.u32 4294901760, %v2149_v51  ;;  %v3068_v21 = vand.u32 4294901760, %v2160_v7  ;;  %v2206_v46 = vsub.f32 %v2053_v29, %v2083_v61 }
  0x58   :  { %3065 = vst [vmem:[#allocation83_spill] sm:$0xff] %v2186_v47  ;;  %513 = vmatpush2.msra.mxu1 %v512_v36  ;;  %3067 = vst [vmem:[#allocation84_spill] sm:$0xff] %v2195_v26  ;;  %v524_v28 = vand.u32 4294901760, %v523_v30  ;;  %236 = vmatpush2.msra.mxu0 %v2182_v41  ;;  %v3070_v43 = vand.u32 4294901760, %v2174_v44  ;;  %v2219_v36 = vsub.f32 %v2076_v50, %v2103_v27 }
  0x59   :  { %v529_v56 = vsub.f32 %v2149_v51, %v3066_v53  ;;  %v535_v37 = vsub.f32 %v2160_v7, %v3068_v21  ;;  %3069 = vst [vmem:[#allocation85_spill] sm:$0xff] %v2206_v46  ;;  %v2208_v53 = vld [vmem:[#allocation5 + $0x130] sm:$0xff]  ;;  %519 = vmatprep.subr.mxu1 %v518_v60  ;;  %238 = vmatprep.subr.mxu0 %v2195_v26  ;;  %v2215_v21 = vand.u32 4294901760, %v2188_v20  ;;  %v2221_v7 = vld [vmem:[#allocation5 + $0x128] sm:$0xff]  ;;  %v3073_v60 = vand.u32 4294901760, %v2186_v47 }
  0x5a   :  { %v541_v30 = vsub.f32 %v2174_v44, %v3070_v43  ;;  %3072 = vst [vmem:[#allocation87_spill] sm:$0xff] %v2219_v36  ;;  %525 = vmatpush2.msra.mxu1 %v524_v28  ;;  %v2228_v43 = vand.u32 4294901760, %v2197_v1  ;;  %v2230_v44 = vld [vmem:[#allocation5 + $0x120] sm:$0xff]  ;;  %v2918_v50 = vand.u32 4294901760, %v2219_v36  ;;  %v2236_v28 = vsub.f32 %v2085_v34, %v2116_v14 }
  0x5b   :  { %v530_v13 = vand.u32 4294901760, %v529_v56  ;;  %3071 = vst [vmem:[#allocation86_spill] sm:$0xff] %v2215_v21  ;;  %v536_v29 = vand.u32 4294901760, %v535_v37  ;;  %v547_v56 = vsub.f32 %v2186_v47, %v3073_v60  ;;  %240 = vmatpush2.msra.mxu0 %v2215_v21  ;;  %v2239_v37 = vand.u32 4294901760, %v2208_v53  ;;  %v2241_v60 = vld [vmem:[#allocation5 + $0x118] sm:$0xff] }
  0x5c   :  { %3074 = vst [vmem:[#allocation88_spill] sm:$0xff] %v2228_v43  ;;  %v542_v51 = vand.u32 4294901760, %v541_v30  ;;  %3075 = vst [vmem:[#allocation89_spill] sm:$0xff] %v2236_v28  ;;  %v3076_v27 = vand.u32 4294901760, %v2206_v46  ;;  %242 = vmatprep.subr.mxu0 %v2228_v43  ;;  %v2249_v30 = vsub.f32 %v2096_v62, %v2127_v49  ;;  %v2252_v34 = vand.u32 4294901760, %v2221_v7  ;;  %v2266_v62 = vld [vmem:[#allocation5 + $0x110] sm:$0xff] }
  0x5d   :  { %531 = vmatprep.subr.mxu1 %v530_v13  ;;  %v548_v61 = vand.u32 4294901760, %v547_v56  ;;  %v559_v14 = vsub.f32 %v2219_v36, %v2918_v50  ;;  %244 = vmatpush2.msra.mxu0 %v2239_v37  ;;  %v2264_v56 = vand.u32 4294901760, %v2230_v44  ;;  %v2272_v50 = vsub.f32 %v2118_v38, %v2152_v2  ;;  %v2288_v38 = vld [vmem:[#allocation5 + $0x100] sm:$0xff] }
  0x5e   :  { %537 = vmatpush2.msra.mxu1 %v536_v29  ;;  %v553_v13 = vsub.f32 %v2206_v46, %v3076_v27  ;;  %3077 = vst [vmem:[#allocation90_spill] sm:$0xff] %v2249_v30  ;;  %3078 = vst [vmem:[#allocation91_spill] sm:$0xff] %v2252_v34  ;;  %v2261_v27 = vsub.f32 %v2109_v12, %v2140_v32  ;;  %246 = vmatprep.subr.mxu0 %v2252_v34  ;;  %v2275_v29 = vand.u32 4294901760, %v2241_v60  ;;  %v2277_v12 = vld [vmem:[#allocation5 + $0x108] sm:$0xff] }
  0x5f   :  { %543 = vmatprep.subr.mxu1 %v542_v51  ;;  %3079 = vst [vmem:[#allocation92_spill] sm:$0xff] %v2264_v56  ;;  %v2931_v51 = vand.u32 4294901760, %v2249_v30  ;;  %v560_v32 = vand.u32 4294901760, %v559_v14  ;;  %v3081_v36 = vand.u32 4294901760, %v2236_v28  ;;  %248 = vmatpush2.msra.mxu0 %v2264_v56  ;;  %v2307_v14 = vand.u32 4294901760, %v2277_v12 }
  0x60   :  { %549 = vmatpush2.msra.mxu1 %v548_v61  ;;  %v554_v49 = vand.u32 4294901760, %v553_v13  ;;  %3080 = vst [vmem:[#allocation93_spill] sm:$0xff] %v2275_v29  ;;  %v2286_v13 = vsub.f32 %v2129_v52, %v2163_v39  ;;  %250 = vmatprep.subr.mxu0 %v2275_v29  ;;  %v2300_v61 = vsub.f32 %v2154_v33, %v2182_v41  ;;  %v1441_v52 = vld.sshfl [vmem:[#allocation2] sm:$0x33 pattern:$0x76325410] }
  0x61   :  { %v565_v46 = vsub.f32 %v2236_v28, %v3081_v36  ;;  %v571_v2 = vsub.f32 %v2249_v30, %v2931_v51  ;;  %v2296_v36 = vand.u32 4294901760, %v2266_v62  ;;  %v3085_v47 = vand.u32 4294901760, %v2272_v50 }
  0x62   :  { %3082 = vst [vmem:[#allocation94_spill] sm:$0xff] %v2286_v13  ;;  %555 = vmatprep.subr.mxu1 %v554_v49  ;;  %v3084_v49 = vand.u32 4294901760, %v2261_v27  ;;  %v2940_v51 = vand.u32 4294901760, %v2286_v13 }
  0x63   :  { %3083 = vst [vmem:[#allocation95_spill] sm:$0xff] %v2296_v36  ;;  %561 = vmatpush2.msra.mxu1 %v560_v32  ;;  %v566_v39 = vand.u32 4294901760, %v565_v46  ;;  %v572_v30 = vand.u32 4294901760, %v571_v2  ;;  %v583_v24 = vsub.f32 %v2272_v50, %v3085_v47  ;;  %252 = vmatpush2.msra.mxu0 %v2296_v36  ;;  %v2316_v32 = vsub.f32 %v2165_v19, %v2195_v26 }
  0x64   :  { %v577_v28 = vsub.f32 %v2261_v27, %v3084_v49  ;;  %v589_v49 = vsub.f32 %v2286_v13, %v2940_v51  ;;  %254 = vmatprep.subr.mxu0 %v2307_v14  ;;  %v2323_v2 = vand.u32 4294901760, %v2288_v38  ;;  %v2327_v47 = vsub.f32 %v2188_v20, %v2215_v21 }
  0x65   :  { %567 = vmatprep.subr.mxu1 %v566_v39  ;;  %v584_v33 = vand.u32 4294901760, %v583_v24  ;;  %v3086_v19 = vand.u32 4294901760, %v2300_v61  ;;  %v126_v26 = vcombine.high %v1441_v52, %v1441_v52  ;;  %v2335_v13 = vand.u32 4294901760, %v1441_v52 }
  0x66   :  { %v578_v46 = vand.u32 4294901760, %v577_v28  ;;  %573 = vmatpush2.msra.mxu1 %v572_v30  ;;  %v2945_v28 = vand.u32 4294901760, %v2316_v32  ;;  %v590_v51 = vand.u32 4294901760, %v589_v49  ;;  %256 = vmatpush2.msra.mxu0 %v2323_v2  ;;  %v2947_v41 = vand.u32 4294901760, %v2327_v47 }
  0x67   :  { %v595_v39 = vsub.f32 %v2300_v61, %v3086_v19  ;;  %3087 = vst [vmem:[#allocation96_spill] sm:$0xff] %v2335_v13  ;;  %v2339_v20 = vsub.f32 %v2197_v1, %v2228_v43  ;;  %v2344_v19 = vand.u32 4294901760, %v126_v26  ;;  %669 = vmatprep.subr.mxu0 %v1565_v18  ;;  %v2356_v49 = vsub.f32 %v1441_v52, %v2335_v13 }
  0x68   :  { %579 = vmatprep.subr.mxu1 %v578_v46  ;;  %v601_v30 = vsub.f32 %v2316_v32, %v2945_v28  ;;  %v2349_v46 = vsub.f32 %v2208_v53, %v2239_v37  ;;  %v607_v1 = vsub.f32 %v2327_v47, %v2947_v41 }
  0x69   :  { %585 = vmatpush2.msra.mxu1 %v584_v33  ;;  %v596_v24 = vand.u32 4294901760, %v595_v39  ;;  %3088 = vst [vmem:[#allocation97_spill] sm:$0xff] %v2344_v19  ;;  %v2950_v33 = vand.u32 4294901760, %v2339_v20  ;;  %v2360_v39 = vsub.f32 %v2221_v7, %v2252_v34  ;;  %v2363_v18 = vsub.f32 %v126_v26, %v2344_v19  ;;  %659 = vmatprep.mubr.f32.mxu1 %v2344_v19 }
  0x6a   :  { %591 = vmatprep.subr.mxu1 %v590_v51  ;;  %v602_v28 = vand.u32 4294901760, %v601_v30  ;;  %v2951_v53 = vand.u32 4294901760, %v2349_v46  ;;  %v2368_v51 = vsub.f32 %v2230_v44, %v2264_v56  ;;  %v608_v41 = vand.u32 4294901760, %v607_v1 }
  0x6b   :  { %597 = vmatpush2.msra.mxu1 %v596_v24  ;;  %v613_v52 = vsub.f32 %v2339_v20, %v2950_v33  ;;  %v2954_v7 = vand.u32 4294901760, %v2356_v49  ;;  %v2957_v24 = vand.u32 4294901760, %v2360_v39  ;;  %v2383_v1 = vsub.f32 %v2241_v60, %v2275_v29 }
  0x6c   :  { %603 = vmatprep.subr.mxu1 %v602_v28  ;;  %v619_v30 = vsub.f32 %v2349_v46, %v2951_v53  ;;  %v2393_v26 = vsub.f32 %v2266_v62, %v2296_v36  ;;  %v3090_v53 = vand.u32 4294901760, %v2363_v18  ;;  %v2405_v62 = vsub.f32 %v2277_v12, %v2307_v14 }
  0x6d   :  { %609 = vmatpush2.msra.mxu1 %v608_v41  ;;  %v614_v19 = vand.u32 4294901760, %v613_v52  ;;  %v266_v33 = vsub.f32 %v2356_v49, %v2954_v7  ;;  %v625_v28 = vsub.f32 %v2360_v39, %v2957_v24  ;;  %v3091_v41 = vand.u32 4294901760, %v2368_v51 }
  0x6e   :  { %3089 = vst [vmem:[#allocation98_spill] sm:$0xff] %v2393_v26  ;;  %v260_v44 = vsub.f32 %v2363_v18, %v3090_v53  ;;  %v620_v60 = vand.u32 4294901760, %v619_v30  ;;  %v2965_v29 = vand.u32 4294901760, %v2383_v1  ;;  %v2964_v24 = vand.u32 4294901760, %v2393_v26 }
  0x6f   :  { %v631_v52 = vsub.f32 %v2368_v51, %v3091_v41  ;;  %615 = vmatprep.subr.mxu1 %v614_v19  ;;  %v267_v7 = vand.u32 4294901760, %v266_v33  ;;  %v626_v56 = vand.u32 4294901760, %v625_v28  ;;  %v2412_v30 = vsub.f32 %v2288_v38, %v2323_v2  ;;  %v3095_v41 = vld [vmem:[#allocation13_spill] sm:$0xff] }
  0x70   :  { %v261_v36 = vand.u32 4294901760, %v260_v44  ;;  %621 = vmatpush2.msra.mxu1 %v620_v60  ;;  %v637_v53 = vsub.f32 %v2383_v1, %v2965_v29  ;;  %v643_v19 = vsub.f32 %v2393_v26, %v2964_v24  ;;  %v2963_v33 = vand.u32 4294901760, %v2405_v62  ;;  %v3107_v24 = vld [vmem:[#allocation19_spill] sm:$0xff] }
  0x71   :  { %v632_v34 = vand.u32 4294901760, %v631_v52  ;;  %3092 = vst [vmem:[#allocation99_spill] sm:$0xff] %v2412_v30  ;;  %627 = vmatprep.subr.mxu1 %v626_v56  ;;  %v2962_v44 = vand.u32 4294901760, %v2412_v30  ;;  %v3096_v52 = vld [vmem:[#allocation31_spill] sm:$0xff] }
  0x72   :  { %262 = vmatprep.mubr.f32.mxu0 %v261_v36  ;;  %v638_v12 = vand.u32 4294901760, %v637_v53  ;;  %v644_v28 = vand.u32 4294901760, %v643_v19  ;;  %v649_v60 = vsub.f32 %v2405_v62, %v2963_v33  ;;  %v3093_v36 = vld [vmem:[#allocation12_spill] sm:$0xff]  ;;  %v3097_v53 = vld [vmem:[#allocation14_spill] sm:$0xff]  ;;  %v3098_v19 = vld [vmem:[#allocation33_spill] sm:$0xff] }
  0x73   :  { %633 = vmatpush2.msra.mxu1 %v632_v34  ;;  %268 = vmatmul.mubr.f32.vlgmr.msra.gmra.mxu0 %v267_v7  ;;  %v655_v56 = vsub.f32 %v2412_v30, %v2962_v44  ;;  %v3094_v7 = vld [vmem:[#allocation29_spill] sm:$0xff]  ;;  %v3105_v44 = vld [vmem:[#allocation18_spill] sm:$0xff]  ;;  %v3108_v29 = vld [vmem:[#allocation43_spill] sm:$0xff] }
  0x74   :  { %672 = vmatpush1.msra.mxu0 %v1578_v23  ;;  %639 = vmatprep.subr.mxu1 %v638_v12  ;;  %v650_v34 = vand.u32 4294901760, %v649_v60  ;;  %v3099_v12 = vld [vmem:[#allocation15_spill] sm:$0xff]  ;;  %v3101_v60 = vld [vmem:[#allocation16_spill] sm:$0xff]  ;;  %v3106_v33 = vld [vmem:[#allocation41_spill] sm:$0xff] }
  0x75   :  { %675 = vmatprep.subr.mxu0 %v1584_v25  ;;  %645 = vmatpush2.msra.mxu1 %v644_v28  ;;  %v656_v38 = vand.u32 4294901760, %v655_v56  ;;  %v3100_v28 = vld [vmem:[#allocation35_spill] sm:$0xff]  ;;  %v3102_v56 = vld [vmem:[#allocation37_spill] sm:$0xff] }
  0x76   :  { %678 = vmatpush1.msra.mxu0 %v1598_v31  ;;  %861 = vmatprep.mubr.f32.mxu0 %v2363_v18 }
  0x77   :  { %681 = vmatprep.subr.mxu0 %v1607_v35  ;;  %651 = vmatprep.subr.mxu1 %v650_v34  ;;  %v3103_v34 = vld [vmem:[#allocation17_spill] sm:$0xff] }
  0x78   :  { %684 = vmatpush1.msra.mxu0 %v1620_v40  ;;  %657 = vmatpush2.msra.mxu1 %v656_v38  ;;  %v3104_v38 = vld [vmem:[#allocation39_spill] sm:$0xff] }
  0x79   :  { %687 = vmatprep.subr.mxu0 %v1634_v45  ;;  %661 = vmatmul.mubr.f32.vlgmr.msra.gmra.mxu1 %v2335_v13  ;;  %v3109_v13 = vld [vmem:[#allocation20_spill] sm:$0xff] }
  0x7a   :  { %690 = vmatpush1.msra.mxu0 %v1660_v59  ;;  %871 = vmatprep.subr.mxu1 %v1545_v3 }
  0x7b   :  { %693 = vmatprep.subr.mxu0 %v1672_v0  ;;  %873 = vmatpush1.msra.mxu1 %v1547_v4 }
  0x7c   :  { %696 = vmatpush1.msra.mxu0 %v1683_v8  ;;  %875 = vmatprep.subr.mxu1 %v1549_v5 }
  0x7d   :  { %699 = vmatprep.subr.mxu0 %v1694_v42  ;;  %877 = vmatpush1.msra.mxu1 %v1551_v9 }
  0x7e   :  { %702 = vmatpush1.msra.mxu0 %v1706_v48  ;;  %879 = vmatprep.subr.mxu1 %v1553_v10 }
  0x7f   :  { %705 = vmatprep.subr.mxu0 %v1720_v57  ;;  %881 = vmatpush1.msra.mxu1 %v1555_v11 }
  0x80   :  { %708 = vmatpush1.msra.mxu0 %v1732_v6  ;;  %883 = vmatprep.subr.mxu1 %v1558_v15 }
  0x81   :  { %711 = vmatprep.subr.mxu0 %v1753_v54  ;;  %885 = vmatpush1.msra.mxu1 %v1560_v16 }
  0x82   :  { %714 = vmatpush1.msra.mxu0 %v1766_v63  ;;  %887 = vmatprep.subr.mxu1 %v1562_v17 }
  0x83   :  { %717 = vmatprep.subr.mxu0 %v1784_v55  ;;  %889 = vmatpush1.msra.mxu1 %v1575_v22 }
  0x84   :  { %720 = vmatpush1.msra.mxu0 %v1797_v58  ;;  %891 = vmatprep.subr.mxu1 %v3093_v36 }
  0x85   :  { %723 = vmatprep.subr.mxu0 %v3094_v7  ;;  %893 = vmatpush1.msra.mxu1 %v3095_v41 }
  0x86   :  { %726 = vmatpush1.msra.mxu0 %v3096_v52  ;;  %895 = vmatprep.subr.mxu1 %v3097_v53 }
  0x87   :  { %729 = vmatprep.subr.mxu0 %v3098_v19  ;;  %897 = vmatpush1.msra.mxu1 %v3099_v12  ;;  %v3110_v12 = vld [vmem:[#allocation45_spill] sm:$0xff] }
  0x88   :  { %732 = vmatpush1.msra.mxu0 %v3100_v28  ;;  %899 = vmatprep.subr.mxu1 %v3101_v60  ;;  %v3111_v28 = vld [vmem:[#allocation21_spill] sm:$0xff]  ;;  %v3112_v60 = vld [vmem:[#allocation47_spill] sm:$0xff] }
  0x89   :  { %735 = vmatprep.subr.mxu0 %v3102_v56  ;;  %901 = vmatpush1.msra.mxu1 %v3103_v34  ;;  %v3113_v56 = vld [vmem:[#allocation22_spill] sm:$0xff]  ;;  %v3114_v34 = vld [vmem:[#allocation49_spill] sm:$0xff] }
  0x8a   :  { %738 = vmatpush1.msra.mxu0 %v3104_v38  ;;  %903 = vmatprep.subr.mxu1 %v3105_v44  ;;  %v3115_v38 = vld [vmem:[#allocation23_spill] sm:$0xff] }
  0x8b   :  { %741 = vmatprep.subr.mxu0 %v3106_v33  ;;  %905 = vmatpush1.msra.mxu1 %v3107_v24  ;;  %v3116_v44 = vld [vmem:[#allocation51_spill] sm:$0xff]  ;;  %v3117_v33 = vld [vmem:[#allocation24_spill] sm:$0xff]  ;;  %v3118_v24 = vld [vmem:[#allocation53_spill] sm:$0xff] }
  0x8c   :  { %744 = vmatpush1.msra.mxu0 %v3108_v29  ;;  %907 = vmatprep.subr.mxu1 %v3109_v13  ;;  %v3119_v29 = vld [vmem:[#allocation25_spill] sm:$0xff]  ;;  %v3120_v13 = vld [vmem:[#allocation55_spill] sm:$0xff] }
  0x8d   :  { %747 = vmatprep.subr.mxu0 %v3110_v12  ;;  %909 = vmatpush1.msra.mxu1 %v3111_v28  ;;  %v3121_v12 = vld [vmem:[#allocation26_spill] sm:$0xff]  ;;  %v3122_v28 = vld [vmem:[#allocation57_spill] sm:$0xff] }
  0x8e   :  { %750 = vmatpush1.msra.mxu0 %v3112_v60  ;;  %911 = vmatprep.subr.mxu1 %v3113_v56  ;;  %v3123_v60 = vld [vmem:[#allocation27_spill] sm:$0xff] }
  0x8f   :  { %753 = vmatprep.subr.mxu0 %v3114_v34  ;;  %913 = vmatpush1.msra.mxu1 %v3115_v38  ;;  %v3124_v56 = vld [vmem:[#allocation59_spill] sm:$0xff]  ;;  %v3125_v34 = vld [vmem:[#allocation28_spill] sm:$0xff]  ;;  %v3126_v38 = vld [vmem:[#allocation61_spill] sm:$0xff] }
  0x90   :  { %756 = vmatpush1.msra.mxu0 %v3116_v44  ;;  %915 = vmatprep.subr.mxu1 %v3117_v33  ;;  %v3127_v44 = vld [vmem:[#allocation30_spill] sm:$0xff]  ;;  %v3128_v33 = vld [vmem:[#allocation63_spill] sm:$0xff] }
  0x91   :  { %759 = vmatprep.subr.mxu0 %v3118_v24  ;;  %917 = vmatpush1.msra.mxu1 %v3119_v29  ;;  %v3129_v24 = vld [vmem:[#allocation32_spill] sm:$0xff]  ;;  %v3130_v29 = vld [vmem:[#allocation65_spill] sm:$0xff] }
  0x92   :  { %762 = vmatpush1.msra.mxu0 %v3120_v13  ;;  %919 = vmatprep.subr.mxu1 %v3121_v12  ;;  %v3131_v13 = vld [vmem:[#allocation34_spill] sm:$0xff]  ;;  %v3132_v12 = vld [vmem:[#allocation67_spill] sm:$0xff] }
  0x93   :  { %765 = vmatprep.subr.mxu0 %v3122_v28  ;;  %921 = vmatpush1.msra.mxu1 %v3123_v60  ;;  %v3133_v28 = vld [vmem:[#allocation36_spill] sm:$0xff]  ;;  %v3134_v60 = vld [vmem:[#allocation69_spill] sm:$0xff] }
  0x94   :  { %768 = vmatpush2.msra.mxu0 %v3124_v56  ;;  %923 = vmatprep.subr.mxu1 %v3125_v34  ;;  %v3135_v56 = vld [vmem:[#allocation38_spill] sm:$0xff]  ;;  %v3136_v34 = vld [vmem:[#allocation71_spill] sm:$0xff] }
  0x95   :  { %771 = vmatprep.subr.mxu0 %v3126_v38  ;;  %925 = vmatpush1.msra.mxu1 %v3127_v44  ;;  %v3137_v38 = vld [vmem:[#allocation40_spill] sm:$0xff]  ;;  %v3138_v44 = vld [vmem:[#allocation73_spill] sm:$0xff] }
  0x96   :  { %774 = vmatpush2.msra.mxu0 %v3128_v33  ;;  %927 = vmatprep.subr.mxu1 %v3129_v24  ;;  %v3139_v33 = vld [vmem:[#allocation42_spill] sm:$0xff]  ;;  %v3140_v24 = vld [vmem:[#allocation75_spill] sm:$0xff] }
  0x97   :  { %777 = vmatprep.subr.mxu0 %v3130_v29  ;;  %929 = vmatpush1.msra.mxu1 %v3131_v13  ;;  %v3141_v29 = vld [vmem:[#allocation44_spill] sm:$0xff]  ;;  %v3142_v13 = vld [vmem:[#allocation77_spill] sm:$0xff] }
  0x98   :  { %780 = vmatpush2.msra.mxu0 %v3132_v12  ;;  %931 = vmatprep.subr.mxu1 %v3133_v28  ;;  %v3143_v12 = vld [vmem:[#allocation46_spill] sm:$0xff]  ;;  %v3144_v28 = vld [vmem:[#allocation79_spill] sm:$0xff] }
  0x99   :  { %783 = vmatprep.subr.mxu0 %v3134_v60  ;;  %933 = vmatpush1.msra.mxu1 %v3135_v56  ;;  %v3145_v60 = vld [vmem:[#allocation48_spill] sm:$0xff]  ;;  %v3146_v56 = vld [vmem:[#allocation81_spill] sm:$0xff] }
  0x9a   :  { %786 = vmatpush2.msra.mxu0 %v3136_v34  ;;  %935 = vmatprep.subr.mxu1 %v3137_v38  ;;  %v3147_v34 = vld [vmem:[#allocation50_spill] sm:$0xff]  ;;  %v3148_v38 = vld [vmem:[#allocation83_spill] sm:$0xff] }
  0x9b   :  { %789 = vmatprep.subr.mxu0 %v3138_v44  ;;  %937 = vmatpush2.msra.mxu1 %v3139_v33  ;;  %v3149_v44 = vld [vmem:[#allocation52_spill] sm:$0xff]  ;;  %v3150_v33 = vld [vmem:[#allocation85_spill] sm:$0xff] }
  0x9c   :  { %792 = vmatpush2.msra.mxu0 %v3140_v24  ;;  %939 = vmatprep.subr.mxu1 %v3141_v29  ;;  %v3151_v24 = vld [vmem:[#allocation54_spill] sm:$0xff]  ;;  %v3152_v29 = vld [vmem:[#allocation87_spill] sm:$0xff] }
  0x9d   :  { %795 = vmatprep.subr.mxu0 %v3142_v13  ;;  %941 = vmatpush2.msra.mxu1 %v3143_v12  ;;  %v3153_v13 = vld [vmem:[#allocation56_spill] sm:$0xff]  ;;  %v3154_v12 = vld [vmem:[#allocation89_spill] sm:$0xff] }
  0x9e   :  { %798 = vmatpush2.msra.mxu0 %v3144_v28  ;;  %943 = vmatprep.subr.mxu1 %v3145_v60  ;;  %v3155_v28 = vld [vmem:[#allocation58_spill] sm:$0xff] }
  0x9f   :  { %801 = vmatprep.subr.mxu0 %v3146_v56  ;;  %945 = vmatpush2.msra.mxu1 %v3147_v34  ;;  %v3156_v60 = vld [vmem:[#allocation90_spill] sm:$0xff]  ;;  %v3157_v56 = vld [vmem:[#allocation60_spill] sm:$0xff] }
  0xa0   :  { %804 = vmatpush2.msra.mxu0 %v3148_v38  ;;  %947 = vmatprep.subr.mxu1 %v3149_v44  ;;  %v3158_v34 = vld [vmem:[#allocation62_spill] sm:$0xff]  ;;  %v3159_v44 = vld [vmem:[#allocation64_spill] sm:$0xff] }
  0xa1   :  { %807 = vmatprep.subr.mxu0 %v3150_v33  ;;  %949 = vmatpush2.msra.mxu1 %v3151_v24  ;;  %v3160_v24 = vld [vmem:[#allocation94_spill] sm:$0xff] }
  0xa2   :  { %810 = vmatpush2.msra.mxu0 %v3152_v29  ;;  %951 = vmatprep.subr.mxu1 %v3153_v13  ;;  %v3161_v29 = vld [vmem:[#allocation66_spill] sm:$0xff]  ;;  %v3162_v13 = vld [vmem:[#allocation68_spill] sm:$0xff] }
  0xa3   :  { %813 = vmatprep.subr.mxu0 %v3154_v12  ;;  %953 = vmatpush2.msra.mxu1 %v3155_v28  ;;  %v3163_v28 = vld [vmem:[#allocation70_spill] sm:$0xff] }
  0xa4   :  { %816 = vmatpush2.msra.mxu0 %v3156_v60  ;;  %955 = vmatprep.subr.mxu1 %v3157_v56  ;;  %v3164_v56 = vld [vmem:[#allocation72_spill] sm:$0xff] }
  0xa5   :  { %819 = vmatprep.subr.mxu0 %v2261_v27  ;;  %957 = vmatpush2.msra.mxu1 %v3158_v34  ;;  %v3165_v34 = vld [vmem:[#allocation74_spill] sm:$0xff] }
  0xa6   :  { %822 = vmatpush2.msra.mxu0 %v2272_v50  ;;  %959 = vmatprep.subr.mxu1 %v3159_v44  ;;  %v3166_v44 = vld [vmem:[#allocation76_spill] sm:$0xff] }
  0xa7   :  { %825 = vmatprep.subr.mxu0 %v3160_v24  ;;  %961 = vmatpush2.msra.mxu1 %v3161_v29  ;;  %v3167_v29 = vld [vmem:[#allocation78_spill] sm:$0xff] }
  0xa8   :  { %828 = vmatpush2.msra.mxu0 %v2300_v61  ;;  %963 = vmatprep.subr.mxu1 %v3162_v13  ;;  %v3168_v13 = vld [vmem:[#allocation80_spill] sm:$0xff] }
  0xa9   :  { %831 = vmatprep.subr.mxu0 %v2316_v32  ;;  %965 = vmatpush2.msra.mxu1 %v3163_v28  ;;  %v3169_v28 = vld [vmem:[#allocation82_spill] sm:$0xff] }
  0xaa   :  { %834 = vmatpush2.msra.mxu0 %v2327_v47  ;;  %967 = vmatprep.subr.mxu1 %v3164_v56  ;;  %v3170_v56 = vld [vmem:[#allocation84_spill] sm:$0xff] }
  0xab   :  { %837 = vmatprep.subr.mxu0 %v2339_v20  ;;  %969 = vmatpush2.msra.mxu1 %v3165_v34 }
  0xac   :  { %840 = vmatpush2.msra.mxu0 %v2349_v46  ;;  %971 = vmatprep.subr.mxu1 %v3166_v44 }
  0xad   :  { %843 = vmatprep.subr.mxu0 %v2360_v39  ;;  %973 = vmatpush2.msra.mxu1 %v3167_v29  ;;  %v3171_v29 = vld [vmem:[#allocation11_spill] sm:$0xff] }
  0xae   :  { %846 = vmatpush2.msra.mxu0 %v2368_v51  ;;  %975 = vmatprep.subr.mxu1 %v3168_v13  ;;  %v3172_v13 = vand.u32 4294901760, %v3171_v29  ;;  %v3179_v29 = vand.u32 4294901760, %v1607_v35  ;;  %v3185_v35 = vand.u32 4294901760, %v2356_v49 }
  0xaf   :  { %849 = vmatprep.subr.mxu0 %v2383_v1  ;;  %977 = vmatpush2.msra.mxu1 %v3169_v28  ;;  %v3173_v28 = vand.u32 4294901760, %v1578_v23  ;;  %v3181_v23 = vand.u32 4294901760, %v1620_v40  ;;  %v3187_v40 = vand.u32 4294901760, %v1683_v8  ;;  %v3201_v8 = vld [vmem:[#allocation15_spill] sm:$0xff] }
  0xb0   :  { %852 = vmatpush2.msra.mxu0 %v2393_v26  ;;  %979 = vmatprep.subr.mxu1 %v3170_v56  ;;  %v3174_v26 = vld [vmem:[#allocation91_spill] sm:$0xff]  ;;  %v3175_v56 = vand.u32 4294901760, %v1584_v25  ;;  %v3182_v25 = vand.u32 4294901760, %v1634_v45  ;;  %v3188_v45 = vand.u32 4294901760, %v1694_v42 }
  0xb1   :  { %855 = vmatprep.subr.mxu0 %v2405_v62  ;;  %981 = vmatpush2.msra.mxu1 %v2215_v21  ;;  %v3176_v21 = vld [vmem:[#allocation92_spill] sm:$0xff] }
  0xb2   :  { %858 = vmatpush2.msra.mxu0 %v2412_v30  ;;  %983 = vmatprep.subr.mxu1 %v2228_v43  ;;  %v3177_v30 = vand.u32 4294901760, %v1598_v31  ;;  %v3178_v43 = vld [vmem:[#allocation93_spill] sm:$0xff]  ;;  %v3183_v31 = vand.u32 4294901760, %v2363_v18  ;;  %v3189_v18 = vand.u32 4294901760, %v1706_v48  ;;  %v3204_v48 = vld [vmem:[#allocation16_spill] sm:$0xff] }
  0xb3   :  { %864 = vmatmul.mubr.f32.vlgmr.msra.gmra.mxu0 %v2356_v49  ;;  %1014 = vmatprep.subr.mxu0 %v3172_v13  ;;  %v3180_v13 = vld [vmem:[#allocation95_spill] sm:$0xff] }
  0xb4   :  { %985 = vmatpush2.msra.mxu1 %v2239_v37  ;;  %1018 = vmatpush1.msra.mxu0 %v3173_v28  ;;  %v3186_v28 = vand.u32 4294901760, %v1672_v0  ;;  %v3211_v49 = vld [vmem:[#allocation43_spill] sm:$0xff] }
  0xb5   :  { %987 = vmatprep.subr.mxu1 %v3174_v26  ;;  %1022 = vmatprep.subr.mxu0 %v3175_v56 }
  0xb6   :  { %989 = vmatpush2.msra.mxu1 %v3176_v21  ;;  %1026 = vmatpush1.msra.mxu0 %v3177_v30  ;;  %v3184_v30 = vand.u32 4294901760, %v1660_v59  ;;  %v3190_v59 = vand.u32 4294901760, %v1720_v57 }
  0xb7   :  { %991 = vmatprep.subr.mxu1 %v3178_v43  ;;  %1030 = vmatprep.subr.mxu0 %v3179_v29  ;;  %v3219_v29 = vld [vmem:[#allocation21_spill] sm:$0xff] }
  0xb8   :  { %993 = vmatpush2.msra.mxu1 %v3180_v13  ;;  %1034 = vmatpush1.msra.mxu0 %v3181_v23  ;;  %v3220_v23 = vld [vmem:[#allocation49_spill] sm:$0xff] }
  0xb9   :  { %995 = vmatprep.subr.mxu1 %v2307_v14  ;;  %1038 = vmatprep.subr.mxu0 %v3182_v25  ;;  %v3221_v25 = vand.u32 4294901760, %v3220_v23  ;;  %v3259_v23 = vld [vmem:[#allocation75_spill] sm:$0xff] }
  0xba   :  { %997 = vmatpush2.msra.mxu1 %v2323_v2  ;;  %1001 = vmatprep.mubr.f32.mxu1 %v3183_v31  ;;  %v3222_v31 = vld [vmem:[#allocation22_spill] sm:$0xff] }
  0xbb   :  { %1042 = vmatpush1.msra.mxu0 %v3184_v30  ;;  %1005 = vmatmul.mubr.f32.vlgmr.msra.gmra.mxu1 %v3185_v35  ;;  %v3223_v30 = vld [vmem:[#allocation51_spill] sm:$0xff] }
  0xbc   :  { %1046 = vmatprep.subr.mxu0 %v3186_v28  ;;  %1277 = vmatprep.subr.mxu1 %v1545_v3  ;;  %v3191_v3 = vand.u32 4294901760, %v1732_v6  ;;  %v3208_v6 = vld [vmem:[#allocation41_spill] sm:$0xff]  ;;  %v3224_v35 = vand.u32 4294901760, %v3223_v30  ;;  %v3225_v28 = vld [vmem:[#allocation23_spill] sm:$0xff] }
  0xbd   :  { %1050 = vmatpush1.msra.mxu0 %v3187_v40  ;;  %1279 = vmatpush1.msra.mxu1 %v1547_v4  ;;  %v3192_v4 = vand.u32 4294901760, %v1753_v54  ;;  %v3205_v54 = vld [vmem:[#allocation39_spill] sm:$0xff]  ;;  %v3226_v40 = vld [vmem:[#allocation53_spill] sm:$0xff] }
  0xbe   :  { %1054 = vmatprep.subr.mxu0 %v3188_v45  ;;  %1281 = vmatprep.subr.mxu1 %v1549_v5  ;;  %v3193_v5 = vand.u32 4294901760, %v1766_v63  ;;  %v3206_v57 = vand.u32 4294901760, %v3205_v54  ;;  %v3207_v63 = vld [vmem:[#allocation17_spill] sm:$0xff]  ;;  %v3227_v45 = vand.u32 4294901760, %v3226_v40  ;;  %v3265_v40 = vld [vmem:[#allocation79_spill] sm:$0xff] }
  0xbf   :  { %1058 = vmatpush1.msra.mxu0 %v3189_v18  ;;  %1283 = vmatpush1.msra.mxu1 %v1551_v9  ;;  %v3194_v9 = vand.u32 4294901760, %v1784_v55  ;;  %v3209_v55 = vand.u32 4294901760, %v3208_v6  ;;  %v3228_v18 = vld [vmem:[#allocation24_spill] sm:$0xff]  ;;  %v3244_v54 = vld [vmem:[#allocation65_spill] sm:$0xff]  ;;  %v3247_v6 = vld [vmem:[#allocation67_spill] sm:$0xff] }
  0xc0   :  { %1062 = vmatprep.subr.mxu0 %v3190_v59  ;;  %1285 = vmatprep.subr.mxu1 %v1553_v10  ;;  %v3195_v10 = vand.u32 4294901760, %v1797_v58  ;;  %v3210_v58 = vld [vmem:[#allocation18_spill] sm:$0xff]  ;;  %v3229_v59 = vld [vmem:[#allocation55_spill] sm:$0xff]  ;;  %v3262_v30 = vld [vmem:[#allocation77_spill] sm:$0xff] }
  0xc1   :  { %1066 = vmatpush1.msra.mxu0 %v3191_v3  ;;  %1287 = vmatpush1.msra.mxu1 %v1555_v11  ;;  %v3196_v11 = vand.u32 4294901760, %v3094_v7  ;;  %v3213_v7 = vld [vmem:[#allocation19_spill] sm:$0xff]  ;;  %v3230_v3 = vand.u32 4294901760, %v3229_v59  ;;  %v3268_v59 = vld [vmem:[#allocation81_spill] sm:$0xff] }
  0xc2   :  { %1070 = vmatprep.subr.mxu0 %v3192_v4  ;;  %1289 = vmatprep.subr.mxu1 %v1558_v15  ;;  %v3197_v15 = vand.u32 4294901760, %v3096_v52  ;;  %v3231_v4 = vld [vmem:[#allocation25_spill] sm:$0xff] }
  0xc3   :  { %1074 = vmatpush1.msra.mxu0 %v3193_v5  ;;  %1291 = vmatpush1.msra.mxu1 %v1560_v16  ;;  %v3198_v16 = vand.u32 4294901760, %v3098_v19  ;;  %v3217_v19 = vld [vmem:[#allocation47_spill] sm:$0xff]  ;;  %v3232_v5 = vld [vmem:[#allocation57_spill] sm:$0xff] }
  0xc4   :  { %1078 = vmatprep.subr.mxu0 %v3194_v9  ;;  %1293 = vmatprep.subr.mxu1 %v1562_v17  ;;  %v3199_v17 = vld [vmem:[#allocation35_spill] sm:$0xff]  ;;  %v3218_v56 = vand.u32 4294901760, %v3217_v19  ;;  %v3233_v9 = vand.u32 4294901760, %v3232_v5  ;;  %v3256_v19 = vld [vmem:[#allocation73_spill] sm:$0xff]  ;;  %v3271_v5 = vand.u32 4294901760, %v3148_v38  ;;  %v3280_v38 = vand.u32 4294901760, %v3156_v60 }
  0xc5   :  { %1082 = vmatpush1.msra.mxu0 %v3195_v10  ;;  %1295 = vmatpush1.msra.mxu1 %v1575_v22  ;;  %v3200_v0 = vand.u32 4294901760, %v3199_v17  ;;  %v3202_v22 = vld [vmem:[#allocation37_spill] sm:$0xff]  ;;  %v3234_v10 = vld [vmem:[#allocation26_spill] sm:$0xff]  ;;  %v3288_v60 = vand.u32 4294901760, %v2300_v61  ;;  %v3296_v61 = vand.u32 4294901760, %v2349_v46 }
  0xc6   :  { %1086 = vmatprep.subr.mxu0 %v3196_v11  ;;  %1297 = vmatprep.subr.mxu1 %v3093_v36  ;;  %v3203_v42 = vand.u32 4294901760, %v3202_v22  ;;  %v3212_v36 = vand.u32 4294901760, %v3211_v49  ;;  %v3235_v11 = vld [vmem:[#allocation59_spill] sm:$0xff]  ;;  %v3238_v17 = vld [vmem:[#allocation61_spill] sm:$0xff] }
  0xc7   :  { %1090 = vmatpush1.msra.mxu0 %v3197_v15  ;;  %1299 = vmatpush1.msra.mxu1 %v3095_v41  ;;  %v3214_v41 = vld [vmem:[#allocation45_spill] sm:$0xff]  ;;  %v3236_v15 = vand.u32 4294901760, %v3235_v11  ;;  %v3241_v22 = vld [vmem:[#allocation63_spill] sm:$0xff]  ;;  %v3274_v11 = vld [vmem:[#allocation52_spill] sm:$0xff] }
  0xc8   :  { %1094 = vmatprep.subr.mxu0 %v3198_v16  ;;  %1301 = vmatprep.subr.mxu1 %v3097_v53  ;;  %v3215_v52 = vand.u32 4294901760, %v3214_v41  ;;  %v3216_v53 = vld [vmem:[#allocation20_spill] sm:$0xff]  ;;  %v3237_v16 = vld [vmem:[#allocation27_spill] sm:$0xff]  ;;  %v3250_v49 = vld [vmem:[#allocation69_spill] sm:$0xff] }
  0xc9   :  { %1098 = vmatpush1.msra.mxu0 %v3200_v0  ;;  %1303 = vmatpush1.msra.mxu1 %v3201_v8  ;;  %v3239_v0 = vand.u32 4294901760, %v3238_v17  ;;  %v3240_v8 = vld [vmem:[#allocation28_spill] sm:$0xff]  ;;  %v3253_v41 = vld [vmem:[#allocation71_spill] sm:$0xff]  ;;  %v3277_v17 = vld [vmem:[#allocation54_spill] sm:$0xff] }
  0xca   :  { %1102 = vmatprep.subr.mxu0 %v3203_v42  ;;  %1305 = vmatprep.subr.mxu1 %v3204_v48  ;;  %v3242_v42 = vand.u32 4294901760, %v3241_v22  ;;  %v3243_v48 = vld [vmem:[#allocation30_spill] sm:$0xff] }
  0xcb   :  { %1106 = vmatpush1.msra.mxu0 %v3206_v57  ;;  %1307 = vmatpush1.msra.mxu1 %v3207_v63  ;;  %v3245_v57 = vand.u32 4294901760, %v3244_v54  ;;  %v3246_v63 = vld [vmem:[#allocation32_spill] sm:$0xff]  ;;  %v3281_v22 = vld [vmem:[#allocation58_spill] sm:$0xff] }
  0xcc   :  { %1110 = vmatprep.subr.mxu0 %v3209_v55  ;;  %1309 = vmatprep.subr.mxu1 %v3210_v58  ;;  %v3248_v55 = vand.u32 4294901760, %v3247_v6  ;;  %v3249_v58 = vld [vmem:[#allocation34_spill] sm:$0xff]  ;;  %v3291_v6 = vld [vmem:[#allocation68_spill] sm:$0xff] }
  0xcd   :  { %1114 = vmatpush1.msra.mxu0 %v3212_v36  ;;  %1311 = vmatpush1.msra.mxu1 %v3213_v7  ;;  %v3251_v36 = vand.u32 4294901760, %v3250_v49  ;;  %v3252_v7 = vld [vmem:[#allocation36_spill] sm:$0xff]  ;;  %v3285_v54 = vld [vmem:[#allocation62_spill] sm:$0xff] }
  0xce   :  { %1118 = vmatprep.subr.mxu0 %v3215_v52  ;;  %1313 = vmatprep.subr.mxu1 %v3216_v53  ;;  %v3254_v52 = vand.u32 4294901760, %v3253_v41  ;;  %v3255_v53 = vld [vmem:[#allocation38_spill] sm:$0xff] }
  0xcf   :  { %1122 = vmatpush1.msra.mxu0 %v3218_v56  ;;  %1315 = vmatpush1.msra.mxu1 %v3219_v29  ;;  %v3257_v56 = vand.u32 4294901760, %v3256_v19  ;;  %v3258_v29 = vld [vmem:[#allocation40_spill] sm:$0xff]  ;;  %v3299_v49 = vld [vmem:[#allocation78_spill] sm:$0xff] }
  0xd0   :  { %1126 = vmatprep.subr.mxu0 %v3221_v25  ;;  %1317 = vmatprep.subr.mxu1 %v3222_v31  ;;  %v3260_v25 = vand.u32 4294901760, %v3259_v23  ;;  %v3261_v31 = vld [vmem:[#allocation42_spill] sm:$0xff]  ;;  %v3312_v19 = vld [vmem:[#allocation88_spill] sm:$0xff] }
  0xd1   :  { %1130 = vmatpush1.msra.mxu0 %v3224_v35  ;;  %1319 = vmatpush1.msra.mxu1 %v3225_v28  ;;  %v3263_v35 = vand.u32 4294901760, %v3262_v30  ;;  %v3264_v28 = vld [vmem:[#allocation44_spill] sm:$0xff]  ;;  %v3304_v41 = vld [vmem:[#allocation82_spill] sm:$0xff] }
  0xd2   :  { %1134 = vmatprep.subr.mxu0 %v3227_v45  ;;  %1321 = vmatprep.subr.mxu1 %v3228_v18  ;;  %v3266_v45 = vand.u32 4294901760, %v3265_v40  ;;  %v3267_v18 = vld [vmem:[#allocation46_spill] sm:$0xff] }
  0xd3   :  { %1138 = vmatpush1.msra.mxu0 %v3230_v3  ;;  %1323 = vmatpush1.msra.mxu1 %v3231_v4  ;;  %v3269_v3 = vand.u32 4294901760, %v3268_v59  ;;  %v3270_v4 = vld [vmem:[#allocation48_spill] sm:$0xff] }
  0xd4   :  { %1142 = vmatprep.subr.mxu0 %v3233_v9  ;;  %1325 = vmatprep.subr.mxu1 %v3234_v10  ;;  %v3272_v9 = vld [vmem:[#allocation50_spill] sm:$0xff]  ;;  %v3273_v10 = vand.u32 4294901760, %v3150_v33  ;;  %v3282_v33 = vand.u32 4294901760, %v2261_v27  ;;  %v3290_v27 = vand.u32 4294901760, %v2316_v32  ;;  %v3297_v32 = vand.u32 4294901760, %v2360_v39 }
  0xd5   :  { %1146 = vmatpush2.msra.mxu0 %v3236_v15  ;;  %1327 = vmatpush1.msra.mxu1 %v3237_v16  ;;  %v3275_v15 = vld [vmem:[#allocation87_spill] sm:$0xff]  ;;  %v3305_v39 = vand.u32 4294901760, %v2405_v62  ;;  %v108_v62 = vlaneseq }
  0xd6   :  { %1150 = vmatprep.subr.mxu0 %v3239_v0  ;;  %1329 = vmatprep.subr.mxu1 %v3240_v8  ;;  %v3276_v16 = vand.u32 4294901760, %v3275_v15  ;;  %v3278_v0 = vand.u32 4294901760, %v3154_v12  ;;  %v3279_v8 = vld [vmem:[#allocation56_spill] sm:$0xff]  ;;  %v3286_v12 = vand.u32 4294901760, %v3160_v24  ;;  %v3294_v24 = vand.u32 4294901760, %v2339_v20 }
  0xd7   :  { %1154 = vmatpush2.msra.mxu0 %v3242_v42  ;;  %1331 = vmatpush1.msra.mxu1 %v3243_v48  ;;  %v3283_v42 = vld [vmem:[#allocation60_spill] sm:$0xff]  ;;  %v3284_v48 = vand.u32 4294901760, %v2272_v50  ;;  %v3292_v50 = vand.u32 4294901760, %v2327_v47  ;;  %v3298_v47 = vand.u32 4294901760, %v2368_v51  ;;  %v3300_v20 = vand.u32 4294901760, %v2383_v1 }
  0xd8   :  { %1158 = vmatprep.subr.mxu0 %v3245_v57  ;;  %1333 = vmatprep.subr.mxu1 %v3246_v63  ;;  %v3287_v57 = vld [vmem:[#allocation64_spill] sm:$0xff]  ;;  %v3289_v63 = vld [vmem:[#allocation66_spill] sm:$0xff] }
  0xd9   :  { %1162 = vmatpush2.msra.mxu0 %v3248_v55  ;;  %1335 = vmatpush1.msra.mxu1 %v3249_v58  ;;  %v3293_v55 = vld [vmem:[#allocation70_spill] sm:$0xff]  ;;  %v3295_v58 = vld [vmem:[#allocation72_spill] sm:$0xff] }
  0xda   :  { %1166 = vmatprep.subr.mxu0 %v3251_v36  ;;  %1337 = vmatprep.subr.mxu1 %v3252_v7  ;;  %v3301_v36 = vld [vmem:[#allocation80_spill] sm:$0xff]  ;;  %v3302_v7 = vld [vmem:[#allocation98_spill] sm:$0xff] }
  0xdb   :  { %1170 = vmatpush2.msra.mxu0 %v3254_v52  ;;  %1339 = vmatpush1.msra.mxu1 %v3255_v53  ;;  %v3303_v46 = vand.u32 4294901760, %v3302_v7  ;;  %v3309_v52 = vld [vmem:[#allocation97_spill] sm:$0xff]  ;;  %v3310_v53 = vld [vmem:[#allocation86_spill] sm:$0xff]  ;;  %v3311_v1 = vld [vmem:[#allocation96_spill] sm:$0xff] }
  0xdc   :  { %1174 = vmatprep.subr.mxu0 %v3257_v56  ;;  %1341 = vmatprep.subr.mxu1 %v3258_v29  ;;  %v109_v56 = vshrl.u32 %v108_v62, 7 }
  0xdd   :  { %1178 = vmatpush2.msra.mxu0 %v3260_v25  ;;  %1343 = vmatpush2.msra.mxu1 %v3261_v31 }
  0xde   :  { %1182 = vmatprep.subr.mxu0 %v3263_v35  ;;  %1345 = vmatprep.subr.mxu1 %v3264_v28  ;;  %v110_v23 = vsub.s32 0, %v109_v56  ;;  %v114_v25 = vsub.s32 1, %v109_v56 }
  0xdf   :  { %1186 = vmatpush2.msra.mxu0 %v3266_v45  ;;  %1347 = vmatpush2.msra.mxu1 %v3267_v18 }
  0xe0   :  { %1190 = vmatprep.subr.mxu0 %v3269_v3  ;;  %1349 = vmatprep.subr.mxu1 %v3270_v4 }
  0xe1   :  { %1194 = vmatpush2.msra.mxu0 %v3271_v5  ;;  %1351 = vmatpush2.msra.mxu1 %v3272_v9 }
  0xe2   :  { %1198 = vmatprep.subr.mxu0 %v3273_v10  ;;  %1353 = vmatprep.subr.mxu1 %v3274_v11 }
  0xe3   :  { %1202 = vmatpush2.msra.mxu0 %v3276_v16  ;;  %1355 = vmatpush2.msra.mxu1 %v3277_v17 }
  0xe4   :  { %1206 = vmatprep.subr.mxu0 %v3278_v0  ;;  %1357 = vmatprep.subr.mxu1 %v3279_v8 }
  0xe5   :  { %1210 = vmatpush2.msra.mxu0 %v3280_v38  ;;  %1359 = vmatpush2.msra.mxu1 %v3281_v22 }
  0xe6   :  { %1214 = vmatprep.subr.mxu0 %v3282_v33  ;;  %1361 = vmatprep.subr.mxu1 %v3283_v42 }
  0xe7   :  { %1218 = vmatpush2.msra.mxu0 %v3284_v48  ;;  %1363 = vmatpush2.msra.mxu1 %v3285_v54 }
  0xe8   :  { %1222 = vmatprep.subr.mxu0 %v3286_v12  ;;  %1365 = vmatprep.subr.mxu1 %v3287_v57 }
  0xe9   :  { %1226 = vmatpush2.msra.mxu0 %v3288_v60  ;;  %1367 = vmatpush2.msra.mxu1 %v3289_v63 }
  0xea   :  { %1230 = vmatprep.subr.mxu0 %v3290_v27  ;;  %1369 = vmatprep.subr.mxu1 %v3291_v6 }
  0xeb   :  { %1234 = vmatpush2.msra.mxu0 %v3292_v50  ;;  %1371 = vmatpush2.msra.mxu1 %v3293_v55 }
  0xec   :  { %1238 = vmatprep.subr.mxu0 %v3294_v24  ;;  %1373 = vmatprep.subr.mxu1 %v3295_v58 }
  0xed   :  { %1242 = vmatpush2.msra.mxu0 %v3296_v61  ;;  %1375 = vmatpush2.msra.mxu1 %v3165_v34  ;;  %v3306_v34 = vld [vmem:[#allocation84_spill] sm:$0xff] }
  0xee   :  { %1246 = vmatprep.subr.mxu0 %v3297_v32  ;;  %1377 = vmatprep.subr.mxu1 %v3166_v44  ;;  %v3307_v44 = vld [vmem:[#allocation99_spill] sm:$0xff] }
  0xef   :  { %1250 = vmatpush2.msra.mxu0 %v3298_v47  ;;  %1379 = vmatpush2.msra.mxu1 %v3299_v49  ;;  %v3308_v51 = vand.u32 4294901760, %v3307_v44 }
  0xf0   :  { %1254 = vmatprep.subr.mxu0 %v3300_v20  ;;  %1381 = vmatprep.subr.mxu1 %v3301_v36 }
  0xf1   :  { %1258 = vmatpush2.msra.mxu0 %v3303_v46  ;;  %1383 = vmatpush2.msra.mxu1 %v3304_v41 }
  0xf2   :  { %1262 = vmatprep.subr.mxu0 %v3305_v39  ;;  %1385 = vmatprep.subr.mxu1 %v3306_v34 }
  0xf3   :  { %1266 = vmatpush2.msra.mxu0 %v3308_v51  ;;  %1268 = vmatprep.mubr.f32.mxu0 %v3309_v52 }
  0xf4   :  { %1387 = vmatpush2.msra.mxu1 %v3310_v53  ;;  %1270 = vmatmul.mubr.f32.vlgmr.msra.gmra.mxu0 %v3311_v1 }
  0xf5   :  { %1389 = vmatprep.subr.mxu1 %v3312_v19  ;;  %1405 = vmatprep.mubr.f32.mxu1 %v3309_v52 }
  0xf6   :  { %1391 = vmatpush2.msra.mxu1 %v2239_v37  ;;  %v106_v37 = vld [vmem:[%s2763_s2] sm:$0x3]  ;;  %s1518_s2 = smov [#allocation7]  }
  0xf7   :  { %1393 = vmatprep.subr.mxu1 %v3174_v26  ;;  %v115_v31 = vrot.slane %v106_v37, %v114_v25  ;;  %s1431_s24 = sshll.u32 %s1518_s2, 4  ;;  %s1432_s24 = int_to_ptr.vmem [resolvable:$true] %s1431_s24 }
  0xf8   :  { %1395 = vmatpush2.msra.mxu1 %v3176_v21  ;;  %s1488_s25 = scalar_lea.vmem %s1432_s24, 64  ;;  %p1493_p11 = scmp.lt.s32.totalorder %s1432_s24, %s1432_s24 }
  0xf9   :  { %1397 = vmatprep.subr.mxu1 %v3178_v43  ;;  %v111_v43 = vrot.slane %v106_v37, %v110_v23  ;;  %p1489_p10 = scmp.ne.s32.totalorder %s1432_s24, %s1488_s25  ;;  %p1494_p12 = scmp.lt.s32.totalorder %s1488_s25, %s1488_s25 }
  0xfa   :  { %1399 = vmatpush2.msra.mxu1 %v3180_v13 }
  0xfb   :  { %1401 = vmatprep.subr.mxu1 %v2307_v14  ;;  %p1495_p13 = por %p1494_p12, %p1493_p11 }
  0xfc   :  { %1403 = vmatpush2.msra.mxu1 %v2323_v2 }
  0xfd   :  { %1407 = vmatmul.mubr.f32.vlgmr.msra.gmra.mxu1 %v3311_v1  ;;  %p1496_p0 = pnand %p1495_p13, %p1489_p10 }
 0x133   :  { %v269_v29 = vpop.f32.mrf.mxu0 }
 0x134   :  { %v270_v14 = vadd.f32 %v269_v29, %v111_v43 }
 0x135   :  { %v271_v21 = vpop.f32.mrf.mxu0 }
 0x136   :  { %v272_v35 = vadd.f32 %v271_v21, %v115_v31 }
 0x139   :  { %v662_v26 = vpop.f32.mrf.mxu1 }
 0x13a   :  { %v663_v45 = vadd.f32 %v662_v26, %v270_v14 }
 0x13b   :  { %v664_v30 = vpop.f32.mrf.mxu1 }
 0x13c   :  { %v665_v18 = vadd.f32 %v664_v30, %v272_v35 }
 0x173   :  { %v865_v13 = vpop.f32.mrf.mxu0 }
 0x174   :  { %v866_v3 = vadd.f32 %v865_v13, %v663_v45 }
 0x175   :  { %v867_v2 = vpop.f32.mrf.mxu0 }
 0x176   :  { %v868_v4 = vadd.f32 %v867_v2, %v665_v18 }
 0x17b   :  { %v1006_v28 = vpop.f32.mrf.mxu1 }
 0x17c   :  { %v1007_v9 = vadd.f32 %v1006_v28, %v866_v3 }
 0x17d   :  { %v1008_v59 = vpop.f32.mrf.mxu1 }
 0x17e   :  { %v1009_v10 = vadd.f32 %v1008_v59, %v868_v4 }
 0x1b4   :  { %v1271_v40 = vpop.f32.mrf.mxu0 }
 0x1b5   :  { %v1272_v15 = vadd.f32 %v1271_v40, %v1007_v9 }
 0x1b6   :  { %v1273_v5 = vpop.f32.mrf.mxu0 }
 0x1b7   :  { %v1274_v16 = vadd.f32 %v1273_v5, %v1009_v10 }
 0x1bd   :  { %v1408_v11 = vpop.f32.mrf.mxu1 }
 0x1be   :  { %v1409_v0 = vadd.f32 %v1408_v11, %v1272_v15 }
 0x1bf   :  { %v1410_v17 = vpop.f32.mrf.mxu1 }
 0x1c0   :  { %v1411_v8 = vadd.f32 %v1410_v17, %v1274_v16 }
 0x1c2   :  { %v1415_v38 = vcombine.low %v1409_v0, %v1411_v8 }
 0x1c4   :  { %1442 = vst.sshfl [vmem:[#allocation7] sm:$0x33 pattern:$0x76325410] %v1415_v38 }
 0x1c5   :  { %1499 = shalt.err (!%p1496_p0)
}
 0x1c6   :  { %1434 = dma.vmem_to_hbm [thread:$0]  %s1432_s24, 64, %s2764_s3, [#allocation4]  }
 0x1c7   :  { %1512 = dma.done.wait [#allocation4], 64  }
 0x1c8   :  { %1513 = vsyncadd [#allocation4], 4294967232 }
 0x1c9   :  { %1438 = vsyncpa [#allocation3], 1 }
 0x1ca   :  { %1439 = vsyncpa [#allocation6], 1 }
 0x1cb   :  { %1440 = vsyncpa [#allocation4], 1 }

</bundles_post_ra>
